<compile_context>
chip_gen: v7x
topology: tpu7x:2x2x1
jax: 0.10.0
libtpu: 0.0.40
codegen_flags: <defaults>
</compile_context>

<pallas_src>
import math
from functools import partial

import jax
import jax.numpy as jnp
from jax.experimental import pallas as pl
from jax.experimental.pallas import tpu as pltpu

# module-level globals used by the reference PyTorch code
SEQ_LENGTH = 8
INPUT_LENGTH = 16
TGT_LENGTH = 4


# ---------------------------------------------------------------------------
# Fused Pallas kernel: all LSTM layers + ReLU + head Linear in one invocation
# ---------------------------------------------------------------------------
def fused_ins_lstm_kernel(nlayers, S, H, *refs):
    """refs = (x, [wihT, whhT, b] * nlayers, woutT, bout, out)."""
    x_ref = refs[0]
    layer_refs = refs[1:1 + 3 * nlayers]
    wout_ref = refs[1 + 3 * nlayers]
    bout_ref = refs[2 + 3 * nlayers]
    out_ref = refs[3 + 3 * nlayers]

    B = x_ref.shape[0]

    # sigmoid(x) == 0.5*(tanh(x/2)+1): pre-scale the i/f/o gate columns by 0.5
    # once per layer so a SINGLE full-vreg tanh covers all four gates.
    col = jax.lax.broadcasted_iota(jnp.int32, (1, 4 * H), 1)
    gate_scale = jnp.where((col >= 2 * H) & (col < 3 * H),
                           jnp.float32(1.0), jnp.float32(0.5))

    # load & pre-scale weights once, outside the recurrence (free VPU filler)
    wih = [layer_refs[3 * l][...] * gate_scale for l in range(nlayers)]      # (Din_l, 4H)
    whh = [layer_refs[3 * l + 1][...] * gate_scale for l in range(nlayers)]  # (H, 4H)
    b = [layer_refs[3 * l + 2][...] * gate_scale for l in range(nlayers)]    # (1, 4H)

    x = x_ref[...]                                   # (B, S, Din), a few vregs

    h = [jnp.zeros((B, H), jnp.float32) for _ in range(nlayers)]
    c = [jnp.zeros((B, H), jnp.float32) for _ in range(nlayers)]

    # Wavefront recurrence: static unroll over time; at each t every layer's
    # cell depends only on its own previous state and the lower layer's fresh
    # output, so layer l at step t and layer l-1 at step t+1 are independent
    # chains the scheduler can interleave within this single basic block.
    for t in range(S):
        inp = x[:, t, :]                             # (B, Din) — off the recurrent chain
        for l in range(nlayers):
            g = (jnp.dot(inp, wih[l], preferred_element_type=jnp.float32)
                 + jnp.dot(h[l], whh[l], preferred_element_type=jnp.float32)
                 + b[l])                             # (B, 4H); i/f/o cols already halved
            tg = jnp.tanh(g)                         # one EUP push for all four gates
            i_g = 0.5 * (tg[:, 0 * H:1 * H] + 1.0)   # == sigmoid of the unscaled gate
            f_g = 0.5 * (tg[:, 1 * H:2 * H] + 1.0)
            g_g = tg[:, 2 * H:3 * H]
            o_g = 0.5 * (tg[:, 3 * H:4 * H] + 1.0)
            c[l] = f_g * c[l] + i_g * g_g
            h[l] = o_g * jnp.tanh(c[l])
            inp = h[l]                               # vreg-resident inter-layer feed

    # fused head: ReLU + Linear on the last timestep of the top layer.
    # (equals SeqLSTM.forward(x)[:, -1, :] because the Linear is per-timestep)
    h_relu = jnp.maximum(h[-1], 0.0)
    out_ref[...] = (jnp.dot(h_relu, wout_ref[...],
                            preferred_element_type=jnp.float32)
                    + bout_ref[...])


# ---------------------------------------------------------------------------
# Wrapper (no layout ops: x goes straight in, (B, Dout) comes straight out)
# ---------------------------------------------------------------------------
@jax.jit
def ins_lstm_forward(x, lstm_params, woutT, bout):
    """InsLSTM.forward: x (B, S, INPUT_LENGTH) -> (B, narchs*TGT_LENGTH)."""
    B, S, _ = x.shape
    H = lstm_params[0][1].shape[0]
    Dout = woutT.shape[1]

    flat_w = []
    for (wihT, whhT, bb) in lstm_params:
        flat_w += [wihT, whhT, bb]

    kernel = partial(fused_ins_lstm_kernel, len(lstm_params), S, H)
    n_in = 1 + len(flat_w) + 2
    return pl.pallas_call(
        kernel,
        out_shape=jax.ShapeDtypeStruct((B, Dout), jnp.float32),
        in_specs=[pl.BlockSpec(memory_space=pltpu.MemorySpace.VMEM)] * n_in,
        out_specs=pl.BlockSpec(memory_space=pltpu.MemorySpace.VMEM),
    )(x.astype(jnp.float32), *flat_w, woutT, bout)


# ---------------------------------------------------------------------------
# Pure-JAX reference for verification
# ---------------------------------------------------------------------------
def ins_lstm_ref(x, lstm_params, woutT, bout):
    h_seq = x.astype(jnp.float32)                               # (B, S, Din)
    for (wihT, whhT, b) in lstm_params:
        B, S, _ = h_seq.shape
        H = whhT.shape[0]
        h = jnp.zeros((B, H), jnp.float32)
        c = jnp.zeros((B, H), jnp.float32)
        ys = []
        for t in range(S):
            gates = h_seq[:, t, :] @ wihT + h @ whhT + b[0]
            i_g = jax.nn.sigmoid(gates[:, :H])
            f_g = jax.nn.sigmoid(gates[:, H:2 * H])
            g_g = jnp.tanh(gates[:, 2 * H:3 * H])
            o_g = jax.nn.sigmoid(gates[:, 3 * H:])
            c = f_g * c + i_g * g_g
            h = o_g * jnp.tanh(c)
            ys.append(h)
        h_seq = jnp.stack(ys, axis=1)
    out = jnp.maximum(h_seq, 0.0) @ woutT + bout[0]
    return out[:, -1, :]


# ---------------------------------------------------------------------------
# Deterministic parameter construction (PyTorch-style uniform init)
# ---------------------------------------------------------------------------
def build_params(key, nhidden, nlayers, nin, nout):
    k_lstm = 1.0 / math.sqrt(nhidden)
    params = []
    din = nin
    for _ in range(nlayers):
        key, k1, k2, k3, k4 = jax.random.split(key, 5)
        w_ih = jax.random.uniform(k1, (4 * nhidden, din), jnp.float32, -k_lstm, k_lstm)
        w_hh = jax.random.uniform(k2, (4 * nhidden, nhidden), jnp.float32, -k_lstm, k_lstm)
        b_ih = jax.random.uniform(k3, (4 * nhidden,), jnp.float32, -k_lstm, k_lstm)
        b_hh = jax.random.uniform(k4, (4 * nhidden,), jnp.float32, -k_lstm, k_lstm)
        # kernels consume transposed weights and the combined bias as (1, 4H)
        params.append((w_ih.T, w_hh.T, (b_ih + b_hh)[None, :]))
        din = nhidden
    key, k5, k6 = jax.random.split(key, 3)
    k_lin = 1.0 / math.sqrt(nhidden)
    w_out = jax.random.uniform(k5, (nout, nhidden), jnp.float32, -k_lin, k_lin)
    b_out = jax.random.uniform(k6, (nout,), jnp.float32, -k_lin, k_lin)
    return params, w_out.T, b_out[None, :]


if __name__ == "__main__":
    B = 2
    NHIDDEN = 32
    NLAYERS = 2
    NARCHS = 1

    key = jax.random.PRNGKey(0)
    key, kx = jax.random.split(key)
    x = jax.random.normal(kx, (B, SEQ_LENGTH, INPUT_LENGTH), jnp.float32)

    lstm_params, woutT, bout = build_params(
        key, NHIDDEN, NLAYERS, INPUT_LENGTH, NARCHS * TGT_LENGTH)

    out = ins_lstm_forward(x, lstm_params, woutT, bout)
    out = jax.block_until_ready(out)

    ref = ins_lstm_ref(x, lstm_params, woutT, bout)
    assert out.shape == (B, NARCHS * TGT_LENGTH), out.shape
    assert jnp.allclose(out, ref, atol=1e-4, rtol=1e-4), \
        f"mismatch: {jnp.max(jnp.abs(out - ref))}"

    print("KERNEL_OK")
</pallas_src>

<mosaic_0001>
module attributes {stable_mosaic.version = 11 : i64} {
  func.func @fused_ins_lstm_kernel(%arg0: memref<2x8x16xf32, #tpu.memory_space<vmem>>, %arg1: memref<16x128xf32, #tpu.memory_space<vmem>>, %arg2: memref<32x128xf32, #tpu.memory_space<vmem>>, %arg3: memref<1x128xf32, #tpu.memory_space<vmem>>, %arg4: memref<32x128xf32, #tpu.memory_space<vmem>>, %arg5: memref<32x128xf32, #tpu.memory_space<vmem>>, %arg6: memref<1x128xf32, #tpu.memory_space<vmem>>, %arg7: memref<32x4xf32, #tpu.memory_space<vmem>>, %arg8: memref<1x4xf32, #tpu.memory_space<vmem>>, %arg9: memref<2x4xf32, #tpu.memory_space<vmem>>) attributes {dimension_semantics = [], scalar_prefetch = 0 : i64, scratch_operands = 0 : i64, tpu.core_type = #tpu.core_type<tc>} {
    %0 = tpu.iota {dimensions = array<i32: 1>} : vector<1x128xi32>
    %c64_i32 = arith.constant 64 : i32
    %1 = vector.broadcast %c64_i32 : i32 to vector<1x128xi32>
    %2 = arith.cmpi sge, %0, %1 : vector<1x128xi32>
    %c96_i32 = arith.constant 96 : i32
    %3 = vector.broadcast %c96_i32 : i32 to vector<1x128xi32>
    %4 = arith.cmpi slt, %0, %3 : vector<1x128xi32>
    %5 = arith.andi %2, %4 : vector<1x128xi1>
    %cst = arith.constant 1.000000e+00 : f32
    %cst_0 = arith.constant 5.000000e-01 : f32
    %6 = vector.broadcast %cst : f32 to vector<1x128xf32>
    %7 = vector.broadcast %cst_0 : f32 to vector<1x128xf32>
    %8 = arith.select %5, %6, %7 : vector<1x128xi1>, vector<1x128xf32>
    %c0 = arith.constant 0 : index
    %c0_1 = arith.constant 0 : index
    %9 = vector.load %arg1[%c0, %c0_1] : memref<16x128xf32, #tpu.memory_space<vmem>>, vector<16x128xf32>
    %10 = vector.broadcast %8 : vector<1x128xf32> to vector<16x128xf32>
    %11 = arith.mulf %9, %10 : vector<16x128xf32>
    %c0_2 = arith.constant 0 : index
    %c0_3 = arith.constant 0 : index
    %12 = vector.load %arg4[%c0_2, %c0_3] : memref<32x128xf32, #tpu.memory_space<vmem>>, vector<32x128xf32>
    %13 = vector.broadcast %8 : vector<1x128xf32> to vector<32x128xf32>
    %14 = arith.mulf %12, %13 : vector<32x128xf32>
    %c0_4 = arith.constant 0 : index
    %c0_5 = arith.constant 0 : index
    %15 = vector.load %arg2[%c0_4, %c0_5] : memref<32x128xf32, #tpu.memory_space<vmem>>, vector<32x128xf32>
    %16 = vector.broadcast %8 : vector<1x128xf32> to vector<32x128xf32>
    %17 = arith.mulf %15, %16 : vector<32x128xf32>
    %c0_6 = arith.constant 0 : index
    %c0_7 = arith.constant 0 : index
    %18 = vector.load %arg5[%c0_6, %c0_7] : memref<32x128xf32, #tpu.memory_space<vmem>>, vector<32x128xf32>
    %19 = vector.broadcast %8 : vector<1x128xf32> to vector<32x128xf32>
    %20 = arith.mulf %18, %19 : vector<32x128xf32>
    %c0_8 = arith.constant 0 : index
    %c0_9 = arith.constant 0 : index
    %21 = vector.load %arg3[%c0_8, %c0_9] : memref<1x128xf32, #tpu.memory_space<vmem>>, vector<1x128xf32>
    %22 = arith.mulf %21, %8 : vector<1x128xf32>
    %c0_10 = arith.constant 0 : index
    %c0_11 = arith.constant 0 : index
    %23 = vector.load %arg6[%c0_10, %c0_11] : memref<1x128xf32, #tpu.memory_space<vmem>>, vector<1x128xf32>
    %24 = arith.mulf %23, %8 : vector<1x128xf32>
    %c0_12 = arith.constant 0 : index
    %c0_13 = arith.constant 0 : index
    %c0_14 = arith.constant 0 : index
    %25 = vector.load %arg0[%c0_12, %c0_13, %c0_14] : memref<2x8x16xf32, #tpu.memory_space<vmem>>, vector<2x8x16xf32>
    %cst_15 = arith.constant 0.000000e+00 : f32
    %26 = vector.broadcast %cst_15 : f32 to vector<2x32xf32>
    %cst_16 = arith.constant 0.000000e+00 : f32
    %27 = vector.broadcast %cst_16 : f32 to vector<2x32xf32>
    %cst_17 = arith.constant 0.000000e+00 : f32
    %28 = vector.broadcast %cst_17 : f32 to vector<2x32xf32>
    %cst_18 = arith.constant 0.000000e+00 : f32
    %29 = vector.broadcast %cst_18 : f32 to vector<2x32xf32>
    %30 = vector.extract_strided_slice %25 {offsets = [0, 0, 0], sizes = [2, 1, 16], strides = [1, 1, 1]} : vector<2x8x16xf32> to vector<2x1x16xf32>
    %31 = vector.shape_cast %30 : vector<2x1x16xf32> to vector<2x16xf32>
    %cst_19 = arith.constant dense<0.000000e+00> : vector<2x128xf32>
    %32 = tpu.matmul %31, %11, %cst_19 {dimension_numbers = #tpu.dot_dimension_numbers<[1], [0], [0], [1], [0, 0, 1, 1], [], []>} : vector<2x16xf32>, vector<16x128xf32>, vector<2x128xf32> -> vector<2x128xf32>
    %cst_20 = arith.constant dense<0.000000e+00> : vector<2x128xf32>
    %33 = tpu.matmul %26, %17, %cst_20 {dimension_numbers = #tpu.dot_dimension_numbers<[1], [0], [0], [1], [0, 0, 1, 1], [], []>} : vector<2x32xf32>, vector<32x128xf32>, vector<2x128xf32> -> vector<2x128xf32>
    %34 = arith.addf %32, %33 : vector<2x128xf32>
    %35 = vector.broadcast %22 : vector<1x128xf32> to vector<2x128xf32>
    %36 = arith.addf %34, %35 : vector<2x128xf32>
    %37 = math.tanh %36 : vector<2x128xf32>
    %38 = vector.extract_strided_slice %37 {offsets = [0, 0], sizes = [2, 32], strides = [1, 1]} : vector<2x128xf32> to vector<2x32xf32>
    %cst_21 = arith.constant 1.000000e+00 : f32
    %39 = vector.broadcast %cst_21 : f32 to vector<2x32xf32>
    %40 = arith.addf %38, %39 : vector<2x32xf32>
    %cst_22 = arith.constant 5.000000e-01 : f32
    %41 = vector.broadcast %cst_22 : f32 to vector<2x32xf32>
    %42 = arith.mulf %41, %40 : vector<2x32xf32>
    %43 = vector.extract_strided_slice %37 {offsets = [0, 32], sizes = [2, 32], strides = [1, 1]} : vector<2x128xf32> to vector<2x32xf32>
    %cst_23 = arith.constant 1.000000e+00 : f32
    %44 = vector.broadcast %cst_23 : f32 to vector<2x32xf32>
    %45 = arith.addf %43, %44 : vector<2x32xf32>
    %cst_24 = arith.constant 5.000000e-01 : f32
    %46 = vector.broadcast %cst_24 : f32 to vector<2x32xf32>
    %47 = arith.mulf %46, %45 : vector<2x32xf32>
    %48 = vector.extract_strided_slice %37 {offsets = [0, 64], sizes = [2, 32], strides = [1, 1]} : vector<2x128xf32> to vector<2x32xf32>
    %49 = vector.extract_strided_slice %37 {offsets = [0, 96], sizes = [2, 32], strides = [1, 1]} : vector<2x128xf32> to vector<2x32xf32>
    %cst_25 = arith.constant 1.000000e+00 : f32
    %50 = vector.broadcast %cst_25 : f32 to vector<2x32xf32>
    %51 = arith.addf %49, %50 : vector<2x32xf32>
    %cst_26 = arith.constant 5.000000e-01 : f32
    %52 = vector.broadcast %cst_26 : f32 to vector<2x32xf32>
    %53 = arith.mulf %52, %51 : vector<2x32xf32>
    %54 = arith.mulf %47, %28 : vector<2x32xf32>
    %55 = arith.mulf %42, %48 : vector<2x32xf32>
    %56 = arith.addf %54, %55 : vector<2x32xf32>
    %57 = math.tanh %56 : vector<2x32xf32>
    %58 = arith.mulf %53, %57 : vector<2x32xf32>
    %cst_27 = arith.constant dense<0.000000e+00> : vector<2x128xf32>
    %59 = tpu.matmul %58, %14, %cst_27 {dimension_numbers = #tpu.dot_dimension_numbers<[1], [0], [0], [1], [0, 0, 1, 1], [], []>} : vector<2x32xf32>, vector<32x128xf32>, vector<2x128xf32> -> vector<2x128xf32>
    %cst_28 = arith.constant dense<0.000000e+00> : vector<2x128xf32>
    %60 = tpu.matmul %27, %20, %cst_28 {dimension_numbers = #tpu.dot_dimension_numbers<[1], [0], [0], [1], [0, 0, 1, 1], [], []>} : vector<2x32xf32>, vector<32x128xf32>, vector<2x128xf32> -> vector<2x128xf32>
    %61 = arith.addf %59, %60 : vector<2x128xf32>
    %62 = vector.broadcast %24 : vector<1x128xf32> to vector<2x128xf32>
    %63 = arith.addf %61, %62 : vector<2x128xf32>
    %64 = math.tanh %63 : vector<2x128xf32>
    %65 = vector.extract_strided_slice %64 {offsets = [0, 0], sizes = [2, 32], strides = [1, 1]} : vector<2x128xf32> to vector<2x32xf32>
    %cst_29 = arith.constant 1.000000e+00 : f32
    %66 = vector.broadcast %cst_29 : f32 to vector<2x32xf32>
    %67 = arith.addf %65, %66 : vector<2x32xf32>
    %cst_30 = arith.constant 5.000000e-01 : f32
    %68 = vector.broadcast %cst_30 : f32 to vector<2x32xf32>
    %69 = arith.mulf %68, %67 : vector<2x32xf32>
    %70 = vector.extract_strided_slice %64 {offsets = [0, 32], sizes = [2, 32], strides = [1, 1]} : vector<2x128xf32> to vector<2x32xf32>
    %cst_31 = arith.constant 1.000000e+00 : f32
    %71 = vector.broadcast %cst_31 : f32 to vector<2x32xf32>
    %72 = arith.addf %70, %71 : vector<2x32xf32>
    %cst_32 = arith.constant 5.000000e-01 : f32
    %73 = vector.broadcast %cst_32 : f32 to vector<2x32xf32>
    %74 = arith.mulf %73, %72 : vector<2x32xf32>
    %75 = vector.extract_strided_slice %64 {offsets = [0, 64], sizes = [2, 32], strides = [1, 1]} : vector<2x128xf32> to vector<2x32xf32>
    %76 = vector.extract_strided_slice %64 {offsets = [0, 96], sizes = [2, 32], strides = [1, 1]} : vector<2x128xf32> to vector<2x32xf32>
    %cst_33 = arith.constant 1.000000e+00 : f32
    %77 = vector.broadcast %cst_33 : f32 to vector<2x32xf32>
    %78 = arith.addf %76, %77 : vector<2x32xf32>
    %cst_34 = arith.constant 5.000000e-01 : f32
    %79 = vector.broadcast %cst_34 : f32 to vector<2x32xf32>
    %80 = arith.mulf %79, %78 : vector<2x32xf32>
    %81 = arith.mulf %74, %29 : vector<2x32xf32>
    %82 = arith.mulf %69, %75 : vector<2x32xf32>
    %83 = arith.addf %81, %82 : vector<2x32xf32>
    %84 = math.tanh %83 : vector<2x32xf32>
    %85 = arith.mulf %80, %84 : vector<2x32xf32>
    %86 = vector.extract_strided_slice %25 {offsets = [0, 1, 0], sizes = [2, 1, 16], strides = [1, 1, 1]} : vector<2x8x16xf32> to vector<2x1x16xf32>
    %87 = vector.shape_cast %86 : vector<2x1x16xf32> to vector<2x16xf32>
    %cst_35 = arith.constant dense<0.000000e+00> : vector<2x128xf32>
    %88 = tpu.matmul %87, %11, %cst_35 {dimension_numbers = #tpu.dot_dimension_numbers<[1], [0], [0], [1], [0, 0, 1, 1], [], []>} : vector<2x16xf32>, vector<16x128xf32>, vector<2x128xf32> -> vector<2x128xf32>
    %cst_36 = arith.constant dense<0.000000e+00> : vector<2x128xf32>
    %89 = tpu.matmul %58, %17, %cst_36 {dimension_numbers = #tpu.dot_dimension_numbers<[1], [0], [0], [1], [0, 0, 1, 1], [], []>} : vector<2x32xf32>, vector<32x128xf32>, vector<2x128xf32> -> vector<2x128xf32>
    %90 = arith.addf %88, %89 : vector<2x128xf32>
    %91 = vector.broadcast %22 : vector<1x128xf32> to vector<2x128xf32>
    %92 = arith.addf %90, %91 : vector<2x128xf32>
    %93 = math.tanh %92 : vector<2x128xf32>
    %94 = vector.extract_strided_slice %93 {offsets = [0, 0], sizes = [2, 32], strides = [1, 1]} : vector<2x128xf32> to vector<2x32xf32>
    %cst_37 = arith.constant 1.000000e+00 : f32
    %95 = vector.broadcast %cst_37 : f32 to vector<2x32xf32>
    %96 = arith.addf %94, %95 : vector<2x32xf32>
    %cst_38 = arith.constant 5.000000e-01 : f32
    %97 = vector.broadcast %cst_38 : f32 to vector<2x32xf32>
    %98 = arith.mulf %97, %96 : vector<2x32xf32>
    %99 = vector.extract_strided_slice %93 {offsets = [0, 32], sizes = [2, 32], strides = [1, 1]} : vector<2x128xf32> to vector<2x32xf32>
    %cst_39 = arith.constant 1.000000e+00 : f32
    %100 = vector.broadcast %cst_39 : f32 to vector<2x32xf32>
    %101 = arith.addf %99, %100 : vector<2x32xf32>
    %cst_40 = arith.constant 5.000000e-01 : f32
    %102 = vector.broadcast %cst_40 : f32 to vector<2x32xf32>
    %103 = arith.mulf %102, %101 : vector<2x32xf32>
    %104 = vector.extract_strided_slice %93 {offsets = [0, 64], sizes = [2, 32], strides = [1, 1]} : vector<2x128xf32> to vector<2x32xf32>
    %105 = vector.extract_strided_slice %93 {offsets = [0, 96], sizes = [2, 32], strides = [1, 1]} : vector<2x128xf32> to vector<2x32xf32>
    %cst_41 = arith.constant 1.000000e+00 : f32
    %106 = vector.broadcast %cst_41 : f32 to vector<2x32xf32>
    %107 = arith.addf %105, %106 : vector<2x32xf32>
    %cst_42 = arith.constant 5.000000e-01 : f32
    %108 = vector.broadcast %cst_42 : f32 to vector<2x32xf32>
    %109 = arith.mulf %108, %107 : vector<2x32xf32>
    %110 = arith.mulf %103, %56 : vector<2x32xf32>
    %111 = arith.mulf %98, %104 : vector<2x32xf32>
    %112 = arith.addf %110, %111 : vector<2x32xf32>
    %113 = math.tanh %112 : vector<2x32xf32>
    %114 = arith.mulf %109, %113 : vector<2x32xf32>
    %cst_43 = arith.constant dense<0.000000e+00> : vector<2x128xf32>
    %115 = tpu.matmul %114, %14, %cst_43 {dimension_numbers = #tpu.dot_dimension_numbers<[1], [0], [0], [1], [0, 0, 1, 1], [], []>} : vector<2x32xf32>, vector<32x128xf32>, vector<2x128xf32> -> vector<2x128xf32>
    %cst_44 = arith.constant dense<0.000000e+00> : vector<2x128xf32>
    %116 = tpu.matmul %85, %20, %cst_44 {dimension_numbers = #tpu.dot_dimension_numbers<[1], [0], [0], [1], [0, 0, 1, 1], [], []>} : vector<2x32xf32>, vector<32x128xf32>, vector<2x128xf32> -> vector<2x128xf32>
    %117 = arith.addf %115, %116 : vector<2x128xf32>
    %118 = vector.broadcast %24 : vector<1x128xf32> to vector<2x128xf32>
    %119 = arith.addf %117, %118 : vector<2x128xf32>
    %120 = math.tanh %119 : vector<2x128xf32>
    %121 = vector.extract_strided_slice %120 {offsets = [0, 0], sizes = [2, 32], strides = [1, 1]} : vector<2x128xf32> to vector<2x32xf32>
    %cst_45 = arith.constant 1.000000e+00 : f32
    %122 = vector.broadcast %cst_45 : f32 to vector<2x32xf32>
    %123 = arith.addf %121, %122 : vector<2x32xf32>
    %cst_46 = arith.constant 5.000000e-01 : f32
    %124 = vector.broadcast %cst_46 : f32 to vector<2x32xf32>
    %125 = arith.mulf %124, %123 : vector<2x32xf32>
    %126 = vector.extract_strided_slice %120 {offsets = [0, 32], sizes = [2, 32], strides = [1, 1]} : vector<2x128xf32> to vector<2x32xf32>
    %cst_47 = arith.constant 1.000000e+00 : f32
    %127 = vector.broadcast %cst_47 : f32 to vector<2x32xf32>
    %128 = arith.addf %126, %127 : vector<2x32xf32>
    %cst_48 = arith.constant 5.000000e-01 : f32
    %129 = vector.broadcast %cst_48 : f32 to vector<2x32xf32>
    %130 = arith.mulf %129, %128 : vector<2x32xf32>
    %131 = vector.extract_strided_slice %120 {offsets = [0, 64], sizes = [2, 32], strides = [1, 1]} : vector<2x128xf32> to vector<2x32xf32>
    %132 = vector.extract_strided_slice %120 {offsets = [0, 96], sizes = [2, 32], strides = [1, 1]} : vector<2x128xf32> to vector<2x32xf32>
    %cst_49 = arith.constant 1.000000e+00 : f32
    %133 = vector.broadcast %cst_49 : f32 to vector<2x32xf32>
    %134 = arith.addf %132, %133 : vector<2x32xf32>
    %cst_50 = arith.constant 5.000000e-01 : f32
    %135 = vector.broadcast %cst_50 : f32 to vector<2x32xf32>
    %136 = arith.mulf %135, %134 : vector<2x32xf32>
    %137 = arith.mulf %130, %83 : vector<2x32xf32>
    %138 = arith.mulf %125, %131 : vector<2x32xf32>
    %139 = arith.addf %137, %138 : vector<2x32xf32>
    %140 = math.tanh %139 : vector<2x32xf32>
    %141 = arith.mulf %136, %140 : vector<2x32xf32>
    %142 = vector.extract_strided_slice %25 {offsets = [0, 2, 0], sizes = [2, 1, 16], strides = [1, 1, 1]} : vector<2x8x16xf32> to vector<2x1x16xf32>
    %143 = vector.shape_cast %142 : vector<2x1x16xf32> to vector<2x16xf32>
    %cst_51 = arith.constant dense<0.000000e+00> : vector<2x128xf32>
    %144 = tpu.matmul %143, %11, %cst_51 {dimension_numbers = #tpu.dot_dimension_numbers<[1], [0], [0], [1], [0, 0, 1, 1], [], []>} : vector<2x16xf32>, vector<16x128xf32>, vector<2x128xf32> -> vector<2x128xf32>
    %cst_52 = arith.constant dense<0.000000e+00> : vector<2x128xf32>
    %145 = tpu.matmul %114, %17, %cst_52 {dimension_numbers = #tpu.dot_dimension_numbers<[1], [0], [0], [1], [0, 0, 1, 1], [], []>} : vector<2x32xf32>, vector<32x128xf32>, vector<2x128xf32> -> vector<2x128xf32>
    %146 = arith.addf %144, %145 : vector<2x128xf32>
    %147 = vector.broadcast %22 : vector<1x128xf32> to vector<2x128xf32>
    %148 = arith.addf %146, %147 : vector<2x128xf32>
    %149 = math.tanh %148 : vector<2x128xf32>
    %150 = vector.extract_strided_slice %149 {offsets = [0, 0], sizes = [2, 32], strides = [1, 1]} : vector<2x128xf32> to vector<2x32xf32>
    %cst_53 = arith.constant 1.000000e+00 : f32
    %151 = vector.broadcast %cst_53 : f32 to vector<2x32xf32>
    %152 = arith.addf %150, %151 : vector<2x32xf32>
    %cst_54 = arith.constant 5.000000e-01 : f32
    %153 = vector.broadcast %cst_54 : f32 to vector<2x32xf32>
    %154 = arith.mulf %153, %152 : vector<2x32xf32>
    %155 = vector.extract_strided_slice %149 {offsets = [0, 32], sizes = [2, 32], strides = [1, 1]} : vector<2x128xf32> to vector<2x32xf32>
    %cst_55 = arith.constant 1.000000e+00 : f32
    %156 = vector.broadcast %cst_55 : f32 to vector<2x32xf32>
    %157 = arith.addf %155, %156 : vector<2x32xf32>
    %cst_56 = arith.constant 5.000000e-01 : f32
    %158 = vector.broadcast %cst_56 : f32 to vector<2x32xf32>
    %159 = arith.mulf %158, %157 : vector<2x32xf32>
    %160 = vector.extract_strided_slice %149 {offsets = [0, 64], sizes = [2, 32], strides = [1, 1]} : vector<2x128xf32> to vector<2x32xf32>
    %161 = vector.extract_strided_slice %149 {offsets = [0, 96], sizes = [2, 32], strides = [1, 1]} : vector<2x128xf32> to vector<2x32xf32>
    %cst_57 = arith.constant 1.000000e+00 : f32
    %162 = vector.broadcast %cst_57 : f32 to vector<2x32xf32>
    %163 = arith.addf %161, %162 : vector<2x32xf32>
    %cst_58 = arith.constant 5.000000e-01 : f32
    %164 = vector.broadcast %cst_58 : f32 to vector<2x32xf32>
    %165 = arith.mulf %164, %163 : vector<2x32xf32>
    %166 = arith.mulf %159, %112 : vector<2x32xf32>
    %167 = arith.mulf %154, %160 : vector<2x32xf32>
    %168 = arith.addf %166, %167 : vector<2x32xf32>
    %169 = math.tanh %168 : vector<2x32xf32>
    %170 = arith.mulf %165, %169 : vector<2x32xf32>
    %cst_59 = arith.constant dense<0.000000e+00> : vector<2x128xf32>
    %171 = tpu.matmul %170, %14, %cst_59 {dimension_numbers = #tpu.dot_dimension_numbers<[1], [0], [0], [1], [0, 0, 1, 1], [], []>} : vector<2x32xf32>, vector<32x128xf32>, vector<2x128xf32> -> vector<2x128xf32>
    %cst_60 = arith.constant dense<0.000000e+00> : vector<2x128xf32>
    %172 = tpu.matmul %141, %20, %cst_60 {dimension_numbers = #tpu.dot_dimension_numbers<[1], [0], [0], [1], [0, 0, 1, 1], [], []>} : vector<2x32xf32>, vector<32x128xf32>, vector<2x128xf32> -> vector<2x128xf32>
    %173 = arith.addf %171, %172 : vector<2x128xf32>
    %174 = vector.broadcast %24 : vector<1x128xf32> to vector<2x128xf32>
    %175 = arith.addf %173, %174 : vector<2x128xf32>
    %176 = math.tanh %175 : vector<2x128xf32>
    %177 = vector.extract_strided_slice %176 {offsets = [0, 0], sizes = [2, 32], strides = [1, 1]} : vector<2x128xf32> to vector<2x32xf32>
    %cst_61 = arith.constant 1.000000e+00 : f32
    %178 = vector.broadcast %cst_61 : f32 to vector<2x32xf32>
    %179 = arith.addf %177, %178 : vector<2x32xf32>
    %cst_62 = arith.constant 5.000000e-01 : f32
    %180 = vector.broadcast %cst_62 : f32 to vector<2x32xf32>
    %181 = arith.mulf %180, %179 : vector<2x32xf32>
    %182 = vector.extract_strided_slice %176 {offsets = [0, 32], sizes = [2, 32], strides = [1, 1]} : vector<2x128xf32> to vector<2x32xf32>
    %cst_63 = arith.constant 1.000000e+00 : f32
    %183 = vector.broadcast %cst_63 : f32 to vector<2x32xf32>
    %184 = arith.addf %182, %183 : vector<2x32xf32>
    %cst_64 = arith.constant 5.000000e-01 : f32
    %185 = vector.broadcast %cst_64 : f32 to vector<2x32xf32>
    %186 = arith.mulf %185, %184 : vector<2x32xf32>
    %187 = vector.extract_strided_slice %176 {offsets = [0, 64], sizes = [2, 32], strides = [1, 1]} : vector<2x128xf32> to vector<2x32xf32>
    %188 = vector.extract_strided_slice %176 {offsets = [0, 96], sizes = [2, 32], strides = [1, 1]} : vector<2x128xf32> to vector<2x32xf32>
    %cst_65 = arith.constant 1.000000e+00 : f32
    %189 = vector.broadcast %cst_65 : f32 to vector<2x32xf32>
    %190 = arith.addf %188, %189 : vector<2x32xf32>
    %cst_66 = arith.constant 5.000000e-01 : f32
    %191 = vector.broadcast %cst_66 : f32 to vector<2x32xf32>
    %192 = arith.mulf %191, %190 : vector<2x32xf32>
    %193 = arith.mulf %186, %139 : vector<2x32xf32>
    %194 = arith.mulf %181, %187 : vector<2x32xf32>
    %195 = arith.addf %193, %194 : vector<2x32xf32>
    %196 = math.tanh %195 : vector<2x32xf32>
    %197 = arith.mulf %192, %196 : vector<2x32xf32>
    %198 = vector.extract_strided_slice %25 {offsets = [0, 3, 0], sizes = [2, 1, 16], strides = [1, 1, 1]} : vector<2x8x16xf32> to vector<2x1x16xf32>
    %199 = vector.shape_cast %198 : vector<2x1x16xf32> to vector<2x16xf32>
    %cst_67 = arith.constant dense<0.000000e+00> : vector<2x128xf32>
    %200 = tpu.matmul %199, %11, %cst_67 {dimension_numbers = #tpu.dot_dimension_numbers<[1], [0], [0], [1], [0, 0, 1, 1], [], []>} : vector<2x16xf32>, vector<16x128xf32>, vector<2x128xf32> -> vector<2x128xf32>
    %cst_68 = arith.constant dense<0.000000e+00> : vector<2x128xf32>
    %201 = tpu.matmul %170, %17, %cst_68 {dimension_numbers = #tpu.dot_dimension_numbers<[1], [0], [0], [1], [0, 0, 1, 1], [], []>} : vector<2x32xf32>, vector<32x128xf32>, vector<2x128xf32> -> vector<2x128xf32>
    %202 = arith.addf %200, %201 : vector<2x128xf32>
    %203 = vector.broadcast %22 : vector<1x128xf32> to vector<2x128xf32>
    %204 = arith.addf %202, %203 : vector<2x128xf32>
    %205 = math.tanh %204 : vector<2x128xf32>
    %206 = vector.extract_strided_slice %205 {offsets = [0, 0], sizes = [2, 32], strides = [1, 1]} : vector<2x128xf32> to vector<2x32xf32>
    %cst_69 = arith.constant 1.000000e+00 : f32
    %207 = vector.broadcast %cst_69 : f32 to vector<2x32xf32>
    %208 = arith.addf %206, %207 : vector<2x32xf32>
    %cst_70 = arith.constant 5.000000e-01 : f32
    %209 = vector.broadcast %cst_70 : f32 to vector<2x32xf32>
    %210 = arith.mulf %209, %208 : vector<2x32xf32>
    %211 = vector.extract_strided_slice %205 {offsets = [0, 32], sizes = [2, 32], strides = [1, 1]} : vector<2x128xf32> to vector<2x32xf32>
    %cst_71 = arith.constant 1.000000e+00 : f32
    %212 = vector.broadcast %cst_71 : f32 to vector<2x32xf32>
    %213 = arith.addf %211, %212 : vector<2x32xf32>
    %cst_72 = arith.constant 5.000000e-01 : f32
    %214 = vector.broadcast %cst_72 : f32 to vector<2x32xf32>
    %215 = arith.mulf %214, %213 : vector<2x32xf32>
    %216 = vector.extract_strided_slice %205 {offsets = [0, 64], sizes = [2, 32], strides = [1, 1]} : vector<2x128xf32> to vector<2x32xf32>
    %217 = vector.extract_strided_slice %205 {offsets = [0, 96], sizes = [2, 32], strides = [1, 1]} : vector<2x128xf32> to vector<2x32xf32>
    %cst_73 = arith.constant 1.000000e+00 : f32
    %218 = vector.broadcast %cst_73 : f32 to vector<2x32xf32>
    %219 = arith.addf %217, %218 : vector<2x32xf32>
    %cst_74 = arith.constant 5.000000e-01 : f32
    %220 = vector.broadcast %cst_74 : f32 to vector<2x32xf32>
    %221 = arith.mulf %220, %219 : vector<2x32xf32>
    %222 = arith.mulf %215, %168 : vector<2x32xf32>
    %223 = arith.mulf %210, %216 : vector<2x32xf32>
    %224 = arith.addf %222, %223 : vector<2x32xf32>
    %225 = math.tanh %224 : vector<2x32xf32>
    %226 = arith.mulf %221, %225 : vector<2x32xf32>
    %cst_75 = arith.constant dense<0.000000e+00> : vector<2x128xf32>
    %227 = tpu.matmul %226, %14, %cst_75 {dimension_numbers = #tpu.dot_dimension_numbers<[1], [0], [0], [1], [0, 0, 1, 1], [], []>} : vector<2x32xf32>, vector<32x128xf32>, vector<2x128xf32> -> vector<2x128xf32>
    %cst_76 = arith.constant dense<0.000000e+00> : vector<2x128xf32>
    %228 = tpu.matmul %197, %20, %cst_76 {dimension_numbers = #tpu.dot_dimension_numbers<[1], [0], [0], [1], [0, 0, 1, 1], [], []>} : vector<2x32xf32>, vector<32x128xf32>, vector<2x128xf32> -> vector<2x128xf32>
    %229 = arith.addf %227, %228 : vector<2x128xf32>
    %230 = vector.broadcast %24 : vector<1x128xf32> to vector<2x128xf32>
    %231 = arith.addf %229, %230 : vector<2x128xf32>
    %232 = math.tanh %231 : vector<2x128xf32>
    %233 = vector.extract_strided_slice %232 {offsets = [0, 0], sizes = [2, 32], strides = [1, 1]} : vector<2x128xf32> to vector<2x32xf32>
    %cst_77 = arith.constant 1.000000e+00 : f32
    %234 = vector.broadcast %cst_77 : f32 to vector<2x32xf32>
    %235 = arith.addf %233, %234 : vector<2x32xf32>
    %cst_78 = arith.constant 5.000000e-01 : f32
    %236 = vector.broadcast %cst_78 : f32 to vector<2x32xf32>
    %237 = arith.mulf %236, %235 : vector<2x32xf32>
    %238 = vector.extract_strided_slice %232 {offsets = [0, 32], sizes = [2, 32], strides = [1, 1]} : vector<2x128xf32> to vector<2x32xf32>
    %cst_79 = arith.constant 1.000000e+00 : f32
    %239 = vector.broadcast %cst_79 : f32 to vector<2x32xf32>
    %240 = arith.addf %238, %239 : vector<2x32xf32>
    %cst_80 = arith.constant 5.000000e-01 : f32
    %241 = vector.broadcast %cst_80 : f32 to vector<2x32xf32>
    %242 = arith.mulf %241, %240 : vector<2x32xf32>
    %243 = vector.extract_strided_slice %232 {offsets = [0, 64], sizes = [2, 32], strides = [1, 1]} : vector<2x128xf32> to vector<2x32xf32>
    %244 = vector.extract_strided_slice %232 {offsets = [0, 96], sizes = [2, 32], strides = [1, 1]} : vector<2x128xf32> to vector<2x32xf32>
    %cst_81 = arith.constant 1.000000e+00 : f32
    %245 = vector.broadcast %cst_81 : f32 to vector<2x32xf32>
    %246 = arith.addf %244, %245 : vector<2x32xf32>
    %cst_82 = arith.constant 5.000000e-01 : f32
    %247 = vector.broadcast %cst_82 : f32 to vector<2x32xf32>
    %248 = arith.mulf %247, %246 : vector<2x32xf32>
    %249 = arith.mulf %242, %195 : vector<2x32xf32>
    %250 = arith.mulf %237, %243 : vector<2x32xf32>
    %251 = arith.addf %249, %250 : vector<2x32xf32>
    %252 = math.tanh %251 : vector<2x32xf32>
    %253 = arith.mulf %248, %252 : vector<2x32xf32>
    %254 = vector.extract_strided_slice %25 {offsets = [0, 4, 0], sizes = [2, 1, 16], strides = [1, 1, 1]} : vector<2x8x16xf32> to vector<2x1x16xf32>
    %255 = vector.shape_cast %254 : vector<2x1x16xf32> to vector<2x16xf32>
    %cst_83 = arith.constant dense<0.000000e+00> : vector<2x128xf32>
    %256 = tpu.matmul %255, %11, %cst_83 {dimension_numbers = #tpu.dot_dimension_numbers<[1], [0], [0], [1], [0, 0, 1, 1], [], []>} : vector<2x16xf32>, vector<16x128xf32>, vector<2x128xf32> -> vector<2x128xf32>
    %cst_84 = arith.constant dense<0.000000e+00> : vector<2x128xf32>
    %257 = tpu.matmul %226, %17, %cst_84 {dimension_numbers = #tpu.dot_dimension_numbers<[1], [0], [0], [1], [0, 0, 1, 1], [], []>} : vector<2x32xf32>, vector<32x128xf32>, vector<2x128xf32> -> vector<2x128xf32>
    %258 = arith.addf %256, %257 : vector<2x128xf32>
    %259 = vector.broadcast %22 : vector<1x128xf32> to vector<2x128xf32>
    %260 = arith.addf %258, %259 : vector<2x128xf32>
    %261 = math.tanh %260 : vector<2x128xf32>
    %262 = vector.extract_strided_slice %261 {offsets = [0, 0], sizes = [2, 32], strides = [1, 1]} : vector<2x128xf32> to vector<2x32xf32>
    %cst_85 = arith.constant 1.000000e+00 : f32
    %263 = vector.broadcast %cst_85 : f32 to vector<2x32xf32>
    %264 = arith.addf %262, %263 : vector<2x32xf32>
    %cst_86 = arith.constant 5.000000e-01 : f32
    %265 = vector.broadcast %cst_86 : f32 to vector<2x32xf32>
    %266 = arith.mulf %265, %264 : vector<2x32xf32>
    %267 = vector.extract_strided_slice %261 {offsets = [0, 32], sizes = [2, 32], strides = [1, 1]} : vector<2x128xf32> to vector<2x32xf32>
    %cst_87 = arith.constant 1.000000e+00 : f32
    %268 = vector.broadcast %cst_87 : f32 to vector<2x32xf32>
    %269 = arith.addf %267, %268 : vector<2x32xf32>
    %cst_88 = arith.constant 5.000000e-01 : f32
    %270 = vector.broadcast %cst_88 : f32 to vector<2x32xf32>
    %271 = arith.mulf %270, %269 : vector<2x32xf32>
    %272 = vector.extract_strided_slice %261 {offsets = [0, 64], sizes = [2, 32], strides = [1, 1]} : vector<2x128xf32> to vector<2x32xf32>
    %273 = vector.extract_strided_slice %261 {offsets = [0, 96], sizes = [2, 32], strides = [1, 1]} : vector<2x128xf32> to vector<2x32xf32>
    %cst_89 = arith.constant 1.000000e+00 : f32
    %274 = vector.broadcast %cst_89 : f32 to vector<2x32xf32>
    %275 = arith.addf %273, %274 : vector<2x32xf32>
    %cst_90 = arith.constant 5.000000e-01 : f32
    %276 = vector.broadcast %cst_90 : f32 to vector<2x32xf32>
    %277 = arith.mulf %276, %275 : vector<2x32xf32>
    %278 = arith.mulf %271, %224 : vector<2x32xf32>
    %279 = arith.mulf %266, %272 : vector<2x32xf32>
    %280 = arith.addf %278, %279 : vector<2x32xf32>
    %281 = math.tanh %280 : vector<2x32xf32>
    %282 = arith.mulf %277, %281 : vector<2x32xf32>
    %cst_91 = arith.constant dense<0.000000e+00> : vector<2x128xf32>
    %283 = tpu.matmul %282, %14, %cst_91 {dimension_numbers = #tpu.dot_dimension_numbers<[1], [0], [0], [1], [0, 0, 1, 1], [], []>} : vector<2x32xf32>, vector<32x128xf32>, vector<2x128xf32> -> vector<2x128xf32>
    %cst_92 = arith.constant dense<0.000000e+00> : vector<2x128xf32>
    %284 = tpu.matmul %253, %20, %cst_92 {dimension_numbers = #tpu.dot_dimension_numbers<[1], [0], [0], [1], [0, 0, 1, 1], [], []>} : vector<2x32xf32>, vector<32x128xf32>, vector<2x128xf32> -> vector<2x128xf32>
    %285 = arith.addf %283, %284 : vector<2x128xf32>
    %286 = vector.broadcast %24 : vector<1x128xf32> to vector<2x128xf32>
    %287 = arith.addf %285, %286 : vector<2x128xf32>
    %288 = math.tanh %287 : vector<2x128xf32>
    %289 = vector.extract_strided_slice %288 {offsets = [0, 0], sizes = [2, 32], strides = [1, 1]} : vector<2x128xf32> to vector<2x32xf32>
    %cst_93 = arith.constant 1.000000e+00 : f32
    %290 = vector.broadcast %cst_93 : f32 to vector<2x32xf32>
    %291 = arith.addf %289, %290 : vector<2x32xf32>
    %cst_94 = arith.constant 5.000000e-01 : f32
    %292 = vector.broadcast %cst_94 : f32 to vector<2x32xf32>
    %293 = arith.mulf %292, %291 : vector<2x32xf32>
    %294 = vector.extract_strided_slice %288 {offsets = [0, 32], sizes = [2, 32], strides = [1, 1]} : vector<2x128xf32> to vector<2x32xf32>
    %cst_95 = arith.constant 1.000000e+00 : f32
    %295 = vector.broadcast %cst_95 : f32 to vector<2x32xf32>
    %296 = arith.addf %294, %295 : vector<2x32xf32>
    %cst_96 = arith.constant 5.000000e-01 : f32
    %297 = vector.broadcast %cst_96 : f32 to vector<2x32xf32>
    %298 = arith.mulf %297, %296 : vector<2x32xf32>
    %299 = vector.extract_strided_slice %288 {offsets = [0, 64], sizes = [2, 32], strides = [1, 1]} : vector<2x128xf32> to vector<2x32xf32>
    %300 = vector.extract_strided_slice %288 {offsets = [0, 96], sizes = [2, 32], strides = [1, 1]} : vector<2x128xf32> to vector<2x32xf32>
    %cst_97 = arith.constant 1.000000e+00 : f32
    %301 = vector.broadcast %cst_97 : f32 to vector<2x32xf32>
    %302 = arith.addf %300, %301 : vector<2x32xf32>
    %cst_98 = arith.constant 5.000000e-01 : f32
    %303 = vector.broadcast %cst_98 : f32 to vector<2x32xf32>
    %304 = arith.mulf %303, %302 : vector<2x32xf32>
    %305 = arith.mulf %298, %251 : vector<2x32xf32>
    %306 = arith.mulf %293, %299 : vector<2x32xf32>
    %307 = arith.addf %305, %306 : vector<2x32xf32>
    %308 = math.tanh %307 : vector<2x32xf32>
    %309 = arith.mulf %304, %308 : vector<2x32xf32>
    %310 = vector.extract_strided_slice %25 {offsets = [0, 5, 0], sizes = [2, 1, 16], strides = [1, 1, 1]} : vector<2x8x16xf32> to vector<2x1x16xf32>
    %311 = vector.shape_cast %310 : vector<2x1x16xf32> to vector<2x16xf32>
    %cst_99 = arith.constant dense<0.000000e+00> : vector<2x128xf32>
    %312 = tpu.matmul %311, %11, %cst_99 {dimension_numbers = #tpu.dot_dimension_numbers<[1], [0], [0], [1], [0, 0, 1, 1], [], []>} : vector<2x16xf32>, vector<16x128xf32>, vector<2x128xf32> -> vector<2x128xf32>
    %cst_100 = arith.constant dense<0.000000e+00> : vector<2x128xf32>
    %313 = tpu.matmul %282, %17, %cst_100 {dimension_numbers = #tpu.dot_dimension_numbers<[1], [0], [0], [1], [0, 0, 1, 1], [], []>} : vector<2x32xf32>, vector<32x128xf32>, vector<2x128xf32> -> vector<2x128xf32>
    %314 = arith.addf %312, %313 : vector<2x128xf32>
    %315 = vector.broadcast %22 : vector<1x128xf32> to vector<2x128xf32>
    %316 = arith.addf %314, %315 : vector<2x128xf32>
    %317 = math.tanh %316 : vector<2x128xf32>
    %318 = vector.extract_strided_slice %317 {offsets = [0, 0], sizes = [2, 32], strides = [1, 1]} : vector<2x128xf32> to vector<2x32xf32>
    %cst_101 = arith.constant 1.000000e+00 : f32
    %319 = vector.broadcast %cst_101 : f32 to vector<2x32xf32>
    %320 = arith.addf %318, %319 : vector<2x32xf32>
    %cst_102 = arith.constant 5.000000e-01 : f32
    %321 = vector.broadcast %cst_102 : f32 to vector<2x32xf32>
    %322 = arith.mulf %321, %320 : vector<2x32xf32>
    %323 = vector.extract_strided_slice %317 {offsets = [0, 32], sizes = [2, 32], strides = [1, 1]} : vector<2x128xf32> to vector<2x32xf32>
    %cst_103 = arith.constant 1.000000e+00 : f32
    %324 = vector.broadcast %cst_103 : f32 to vector<2x32xf32>
    %325 = arith.addf %323, %324 : vector<2x32xf32>
    %cst_104 = arith.constant 5.000000e-01 : f32
    %326 = vector.broadcast %cst_104 : f32 to vector<2x32xf32>
    %327 = arith.mulf %326, %325 : vector<2x32xf32>
    %328 = vector.extract_strided_slice %317 {offsets = [0, 64], sizes = [2, 32], strides = [1, 1]} : vector<2x128xf32> to vector<2x32xf32>
    %329 = vector.extract_strided_slice %317 {offsets = [0, 96], sizes = [2, 32], strides = [1, 1]} : vector<2x128xf32> to vector<2x32xf32>
    %cst_105 = arith.constant 1.000000e+00 : f32
    %330 = vector.broadcast %cst_105 : f32 to vector<2x32xf32>
    %331 = arith.addf %329, %330 : vector<2x32xf32>
    %cst_106 = arith.constant 5.000000e-01 : f32
    %332 = vector.broadcast %cst_106 : f32 to vector<2x32xf32>
    %333 = arith.mulf %332, %331 : vector<2x32xf32>
    %334 = arith.mulf %327, %280 : vector<2x32xf32>
    %335 = arith.mulf %322, %328 : vector<2x32xf32>
    %336 = arith.addf %334, %335 : vector<2x32xf32>
    %337 = math.tanh %336 : vector<2x32xf32>
    %338 = arith.mulf %333, %337 : vector<2x32xf32>
    %cst_107 = arith.constant dense<0.000000e+00> : vector<2x128xf32>
    %339 = tpu.matmul %338, %14, %cst_107 {dimension_numbers = #tpu.dot_dimension_numbers<[1], [0], [0], [1], [0, 0, 1, 1], [], []>} : vector<2x32xf32>, vector<32x128xf32>, vector<2x128xf32> -> vector<2x128xf32>
    %cst_108 = arith.constant dense<0.000000e+00> : vector<2x128xf32>
    %340 = tpu.matmul %309, %20, %cst_108 {dimension_numbers = #tpu.dot_dimension_numbers<[1], [0], [0], [1], [0, 0, 1, 1], [], []>} : vector<2x32xf32>, vector<32x128xf32>, vector<2x128xf32> -> vector<2x128xf32>
    %341 = arith.addf %339, %340 : vector<2x128xf32>
    %342 = vector.broadcast %24 : vector<1x128xf32> to vector<2x128xf32>
    %343 = arith.addf %341, %342 : vector<2x128xf32>
    %344 = math.tanh %343 : vector<2x128xf32>
    %345 = vector.extract_strided_slice %344 {offsets = [0, 0], sizes = [2, 32], strides = [1, 1]} : vector<2x128xf32> to vector<2x32xf32>
    %cst_109 = arith.constant 1.000000e+00 : f32
    %346 = vector.broadcast %cst_109 : f32 to vector<2x32xf32>
    %347 = arith.addf %345, %346 : vector<2x32xf32>
    %cst_110 = arith.constant 5.000000e-01 : f32
    %348 = vector.broadcast %cst_110 : f32 to vector<2x32xf32>
    %349 = arith.mulf %348, %347 : vector<2x32xf32>
    %350 = vector.extract_strided_slice %344 {offsets = [0, 32], sizes = [2, 32], strides = [1, 1]} : vector<2x128xf32> to vector<2x32xf32>
    %cst_111 = arith.constant 1.000000e+00 : f32
    %351 = vector.broadcast %cst_111 : f32 to vector<2x32xf32>
    %352 = arith.addf %350, %351 : vector<2x32xf32>
    %cst_112 = arith.constant 5.000000e-01 : f32
    %353 = vector.broadcast %cst_112 : f32 to vector<2x32xf32>
    %354 = arith.mulf %353, %352 : vector<2x32xf32>
    %355 = vector.extract_strided_slice %344 {offsets = [0, 64], sizes = [2, 32], strides = [1, 1]} : vector<2x128xf32> to vector<2x32xf32>
    %356 = vector.extract_strided_slice %344 {offsets = [0, 96], sizes = [2, 32], strides = [1, 1]} : vector<2x128xf32> to vector<2x32xf32>
    %cst_113 = arith.constant 1.000000e+00 : f32
    %357 = vector.broadcast %cst_113 : f32 to vector<2x32xf32>
    %358 = arith.addf %356, %357 : vector<2x32xf32>
    %cst_114 = arith.constant 5.000000e-01 : f32
    %359 = vector.broadcast %cst_114 : f32 to vector<2x32xf32>
    %360 = arith.mulf %359, %358 : vector<2x32xf32>
    %361 = arith.mulf %354, %307 : vector<2x32xf32>
    %362 = arith.mulf %349, %355 : vector<2x32xf32>
    %363 = arith.addf %361, %362 : vector<2x32xf32>
    %364 = math.tanh %363 : vector<2x32xf32>
    %365 = arith.mulf %360, %364 : vector<2x32xf32>
    %366 = vector.extract_strided_slice %25 {offsets = [0, 6, 0], sizes = [2, 1, 16], strides = [1, 1, 1]} : vector<2x8x16xf32> to vector<2x1x16xf32>
    %367 = vector.shape_cast %366 : vector<2x1x16xf32> to vector<2x16xf32>
    %cst_115 = arith.constant dense<0.000000e+00> : vector<2x128xf32>
    %368 = tpu.matmul %367, %11, %cst_115 {dimension_numbers = #tpu.dot_dimension_numbers<[1], [0], [0], [1], [0, 0, 1, 1], [], []>} : vector<2x16xf32>, vector<16x128xf32>, vector<2x128xf32> -> vector<2x128xf32>
    %cst_116 = arith.constant dense<0.000000e+00> : vector<2x128xf32>
    %369 = tpu.matmul %338, %17, %cst_116 {dimension_numbers = #tpu.dot_dimension_numbers<[1], [0], [0], [1], [0, 0, 1, 1], [], []>} : vector<2x32xf32>, vector<32x128xf32>, vector<2x128xf32> -> vector<2x128xf32>
    %370 = arith.addf %368, %369 : vector<2x128xf32>
    %371 = vector.broadcast %22 : vector<1x128xf32> to vector<2x128xf32>
    %372 = arith.addf %370, %371 : vector<2x128xf32>
    %373 = math.tanh %372 : vector<2x128xf32>
    %374 = vector.extract_strided_slice %373 {offsets = [0, 0], sizes = [2, 32], strides = [1, 1]} : vector<2x128xf32> to vector<2x32xf32>
    %cst_117 = arith.constant 1.000000e+00 : f32
    %375 = vector.broadcast %cst_117 : f32 to vector<2x32xf32>
    %376 = arith.addf %374, %375 : vector<2x32xf32>
    %cst_118 = arith.constant 5.000000e-01 : f32
    %377 = vector.broadcast %cst_118 : f32 to vector<2x32xf32>
    %378 = arith.mulf %377, %376 : vector<2x32xf32>
    %379 = vector.extract_strided_slice %373 {offsets = [0, 32], sizes = [2, 32], strides = [1, 1]} : vector<2x128xf32> to vector<2x32xf32>
    %cst_119 = arith.constant 1.000000e+00 : f32
    %380 = vector.broadcast %cst_119 : f32 to vector<2x32xf32>
    %381 = arith.addf %379, %380 : vector<2x32xf32>
    %cst_120 = arith.constant 5.000000e-01 : f32
    %382 = vector.broadcast %cst_120 : f32 to vector<2x32xf32>
    %383 = arith.mulf %382, %381 : vector<2x32xf32>
    %384 = vector.extract_strided_slice %373 {offsets = [0, 64], sizes = [2, 32], strides = [1, 1]} : vector<2x128xf32> to vector<2x32xf32>
    %385 = vector.extract_strided_slice %373 {offsets = [0, 96], sizes = [2, 32], strides = [1, 1]} : vector<2x128xf32> to vector<2x32xf32>
    %cst_121 = arith.constant 1.000000e+00 : f32
    %386 = vector.broadcast %cst_121 : f32 to vector<2x32xf32>
    %387 = arith.addf %385, %386 : vector<2x32xf32>
    %cst_122 = arith.constant 5.000000e-01 : f32
    %388 = vector.broadcast %cst_122 : f32 to vector<2x32xf32>
    %389 = arith.mulf %388, %387 : vector<2x32xf32>
    %390 = arith.mulf %383, %336 : vector<2x32xf32>
    %391 = arith.mulf %378, %384 : vector<2x32xf32>
    %392 = arith.addf %390, %391 : vector<2x32xf32>
    %393 = math.tanh %392 : vector<2x32xf32>
    %394 = arith.mulf %389, %393 : vector<2x32xf32>
    %cst_123 = arith.constant dense<0.000000e+00> : vector<2x128xf32>
    %395 = tpu.matmul %394, %14, %cst_123 {dimension_numbers = #tpu.dot_dimension_numbers<[1], [0], [0], [1], [0, 0, 1, 1], [], []>} : vector<2x32xf32>, vector<32x128xf32>, vector<2x128xf32> -> vector<2x128xf32>
    %cst_124 = arith.constant dense<0.000000e+00> : vector<2x128xf32>
    %396 = tpu.matmul %365, %20, %cst_124 {dimension_numbers = #tpu.dot_dimension_numbers<[1], [0], [0], [1], [0, 0, 1, 1], [], []>} : vector<2x32xf32>, vector<32x128xf32>, vector<2x128xf32> -> vector<2x128xf32>
    %397 = arith.addf %395, %396 : vector<2x128xf32>
    %398 = vector.broadcast %24 : vector<1x128xf32> to vector<2x128xf32>
    %399 = arith.addf %397, %398 : vector<2x128xf32>
    %400 = math.tanh %399 : vector<2x128xf32>
    %401 = vector.extract_strided_slice %400 {offsets = [0, 0], sizes = [2, 32], strides = [1, 1]} : vector<2x128xf32> to vector<2x32xf32>
    %cst_125 = arith.constant 1.000000e+00 : f32
    %402 = vector.broadcast %cst_125 : f32 to vector<2x32xf32>
    %403 = arith.addf %401, %402 : vector<2x32xf32>
    %cst_126 = arith.constant 5.000000e-01 : f32
    %404 = vector.broadcast %cst_126 : f32 to vector<2x32xf32>
    %405 = arith.mulf %404, %403 : vector<2x32xf32>
    %406 = vector.extract_strided_slice %400 {offsets = [0, 32], sizes = [2, 32], strides = [1, 1]} : vector<2x128xf32> to vector<2x32xf32>
    %cst_127 = arith.constant 1.000000e+00 : f32
    %407 = vector.broadcast %cst_127 : f32 to vector<2x32xf32>
    %408 = arith.addf %406, %407 : vector<2x32xf32>
    %cst_128 = arith.constant 5.000000e-01 : f32
    %409 = vector.broadcast %cst_128 : f32 to vector<2x32xf32>
    %410 = arith.mulf %409, %408 : vector<2x32xf32>
    %411 = vector.extract_strided_slice %400 {offsets = [0, 64], sizes = [2, 32], strides = [1, 1]} : vector<2x128xf32> to vector<2x32xf32>
    %412 = vector.extract_strided_slice %400 {offsets = [0, 96], sizes = [2, 32], strides = [1, 1]} : vector<2x128xf32> to vector<2x32xf32>
    %cst_129 = arith.constant 1.000000e+00 : f32
    %413 = vector.broadcast %cst_129 : f32 to vector<2x32xf32>
    %414 = arith.addf %412, %413 : vector<2x32xf32>
    %cst_130 = arith.constant 5.000000e-01 : f32
    %415 = vector.broadcast %cst_130 : f32 to vector<2x32xf32>
    %416 = arith.mulf %415, %414 : vector<2x32xf32>
    %417 = arith.mulf %410, %363 : vector<2x32xf32>
    %418 = arith.mulf %405, %411 : vector<2x32xf32>
    %419 = arith.addf %417, %418 : vector<2x32xf32>
    %420 = math.tanh %419 : vector<2x32xf32>
    %421 = arith.mulf %416, %420 : vector<2x32xf32>
    %422 = vector.extract_strided_slice %25 {offsets = [0, 7, 0], sizes = [2, 1, 16], strides = [1, 1, 1]} : vector<2x8x16xf32> to vector<2x1x16xf32>
    %423 = vector.shape_cast %422 : vector<2x1x16xf32> to vector<2x16xf32>
    %cst_131 = arith.constant dense<0.000000e+00> : vector<2x128xf32>
    %424 = tpu.matmul %423, %11, %cst_131 {dimension_numbers = #tpu.dot_dimension_numbers<[1], [0], [0], [1], [0, 0, 1, 1], [], []>} : vector<2x16xf32>, vector<16x128xf32>, vector<2x128xf32> -> vector<2x128xf32>
    %cst_132 = arith.constant dense<0.000000e+00> : vector<2x128xf32>
    %425 = tpu.matmul %394, %17, %cst_132 {dimension_numbers = #tpu.dot_dimension_numbers<[1], [0], [0], [1], [0, 0, 1, 1], [], []>} : vector<2x32xf32>, vector<32x128xf32>, vector<2x128xf32> -> vector<2x128xf32>
    %426 = arith.addf %424, %425 : vector<2x128xf32>
    %427 = vector.broadcast %22 : vector<1x128xf32> to vector<2x128xf32>
    %428 = arith.addf %426, %427 : vector<2x128xf32>
    %429 = math.tanh %428 : vector<2x128xf32>
    %430 = vector.extract_strided_slice %429 {offsets = [0, 0], sizes = [2, 32], strides = [1, 1]} : vector<2x128xf32> to vector<2x32xf32>
    %cst_133 = arith.constant 1.000000e+00 : f32
    %431 = vector.broadcast %cst_133 : f32 to vector<2x32xf32>
    %432 = arith.addf %430, %431 : vector<2x32xf32>
    %cst_134 = arith.constant 5.000000e-01 : f32
    %433 = vector.broadcast %cst_134 : f32 to vector<2x32xf32>
    %434 = arith.mulf %433, %432 : vector<2x32xf32>
    %435 = vector.extract_strided_slice %429 {offsets = [0, 32], sizes = [2, 32], strides = [1, 1]} : vector<2x128xf32> to vector<2x32xf32>
    %cst_135 = arith.constant 1.000000e+00 : f32
    %436 = vector.broadcast %cst_135 : f32 to vector<2x32xf32>
    %437 = arith.addf %435, %436 : vector<2x32xf32>
    %cst_136 = arith.constant 5.000000e-01 : f32
    %438 = vector.broadcast %cst_136 : f32 to vector<2x32xf32>
    %439 = arith.mulf %438, %437 : vector<2x32xf32>
    %440 = vector.extract_strided_slice %429 {offsets = [0, 64], sizes = [2, 32], strides = [1, 1]} : vector<2x128xf32> to vector<2x32xf32>
    %441 = vector.extract_strided_slice %429 {offsets = [0, 96], sizes = [2, 32], strides = [1, 1]} : vector<2x128xf32> to vector<2x32xf32>
    %cst_137 = arith.constant 1.000000e+00 : f32
    %442 = vector.broadcast %cst_137 : f32 to vector<2x32xf32>
    %443 = arith.addf %441, %442 : vector<2x32xf32>
    %cst_138 = arith.constant 5.000000e-01 : f32
    %444 = vector.broadcast %cst_138 : f32 to vector<2x32xf32>
    %445 = arith.mulf %444, %443 : vector<2x32xf32>
    %446 = arith.mulf %439, %392 : vector<2x32xf32>
    %447 = arith.mulf %434, %440 : vector<2x32xf32>
    %448 = arith.addf %446, %447 : vector<2x32xf32>
    %449 = math.tanh %448 : vector<2x32xf32>
    %450 = arith.mulf %445, %449 : vector<2x32xf32>
    %cst_139 = arith.constant dense<0.000000e+00> : vector<2x128xf32>
    %451 = tpu.matmul %450, %14, %cst_139 {dimension_numbers = #tpu.dot_dimension_numbers<[1], [0], [0], [1], [0, 0, 1, 1], [], []>} : vector<2x32xf32>, vector<32x128xf32>, vector<2x128xf32> -> vector<2x128xf32>
    %cst_140 = arith.constant dense<0.000000e+00> : vector<2x128xf32>
    %452 = tpu.matmul %421, %20, %cst_140 {dimension_numbers = #tpu.dot_dimension_numbers<[1], [0], [0], [1], [0, 0, 1, 1], [], []>} : vector<2x32xf32>, vector<32x128xf32>, vector<2x128xf32> -> vector<2x128xf32>
    %453 = arith.addf %451, %452 : vector<2x128xf32>
    %454 = vector.broadcast %24 : vector<1x128xf32> to vector<2x128xf32>
    %455 = arith.addf %453, %454 : vector<2x128xf32>
    %456 = math.tanh %455 : vector<2x128xf32>
    %457 = vector.extract_strided_slice %456 {offsets = [0, 0], sizes = [2, 32], strides = [1, 1]} : vector<2x128xf32> to vector<2x32xf32>
    %cst_141 = arith.constant 1.000000e+00 : f32
    %458 = vector.broadcast %cst_141 : f32 to vector<2x32xf32>
    %459 = arith.addf %457, %458 : vector<2x32xf32>
    %cst_142 = arith.constant 5.000000e-01 : f32
    %460 = vector.broadcast %cst_142 : f32 to vector<2x32xf32>
    %461 = arith.mulf %460, %459 : vector<2x32xf32>
    %462 = vector.extract_strided_slice %456 {offsets = [0, 32], sizes = [2, 32], strides = [1, 1]} : vector<2x128xf32> to vector<2x32xf32>
    %cst_143 = arith.constant 1.000000e+00 : f32
    %463 = vector.broadcast %cst_143 : f32 to vector<2x32xf32>
    %464 = arith.addf %462, %463 : vector<2x32xf32>
    %cst_144 = arith.constant 5.000000e-01 : f32
    %465 = vector.broadcast %cst_144 : f32 to vector<2x32xf32>
    %466 = arith.mulf %465, %464 : vector<2x32xf32>
    %467 = vector.extract_strided_slice %456 {offsets = [0, 64], sizes = [2, 32], strides = [1, 1]} : vector<2x128xf32> to vector<2x32xf32>
    %468 = vector.extract_strided_slice %456 {offsets = [0, 96], sizes = [2, 32], strides = [1, 1]} : vector<2x128xf32> to vector<2x32xf32>
    %cst_145 = arith.constant 1.000000e+00 : f32
    %469 = vector.broadcast %cst_145 : f32 to vector<2x32xf32>
    %470 = arith.addf %468, %469 : vector<2x32xf32>
    %cst_146 = arith.constant 5.000000e-01 : f32
    %471 = vector.broadcast %cst_146 : f32 to vector<2x32xf32>
    %472 = arith.mulf %471, %470 : vector<2x32xf32>
    %473 = arith.mulf %466, %419 : vector<2x32xf32>
    %474 = arith.mulf %461, %467 : vector<2x32xf32>
    %475 = arith.addf %473, %474 : vector<2x32xf32>
    %476 = math.tanh %475 : vector<2x32xf32>
    %477 = arith.mulf %472, %476 : vector<2x32xf32>
    %cst_147 = arith.constant 0.000000e+00 : f32
    %478 = vector.broadcast %cst_147 : f32 to vector<2x32xf32>
    %479 = arith.maximumf %477, %478 : vector<2x32xf32>
    %c0_148 = arith.constant 0 : index
    %c0_149 = arith.constant 0 : index
    %480 = vector.load %arg7[%c0_148, %c0_149] : memref<32x4xf32, #tpu.memory_space<vmem>>, vector<32x4xf32>
    %cst_150 = arith.constant dense<0.000000e+00> : vector<2x4xf32>
    %481 = tpu.matmul %479, %480, %cst_150 {dimension_numbers = #tpu.dot_dimension_numbers<[1], [0], [0], [1], [0, 0, 1, 1], [], []>} : vector<2x32xf32>, vector<32x4xf32>, vector<2x4xf32> -> vector<2x4xf32>
    %c0_151 = arith.constant 0 : index
    %c0_152 = arith.constant 0 : index
    %482 = vector.load %arg8[%c0_151, %c0_152] : memref<1x4xf32, #tpu.memory_space<vmem>>, vector<1x4xf32>
    %483 = vector.broadcast %482 : vector<1x4xf32> to vector<2x4xf32>
    %484 = arith.addf %481, %483 : vector<2x4xf32>
    %c0_153 = arith.constant 0 : index
    %c0_154 = arith.constant 0 : index
    %485 = vector.load %arg9[%c0_153, %c0_154] : memref<2x4xf32, #tpu.memory_space<vmem>>, vector<2x4xf32>
    tpu.vector_store %arg9[%c0_153, %c0_154], %484 {strides = array<i32>} : memref<2x4xf32, #tpu.memory_space<vmem>>, vector<2x4xf32>,
    return
  }
}

</mosaic_0001>

<bundles_post_ra>
// kernel: ins_lstm_forward.1
= control target key start
LH: loop header
LB: loop body
LE: loop exit
PB: predicated region body
PF: predicated region fallthrough
CT: control target
= control target key end

     0   :  { %14 = vsyncpa [#allocation3], 0  ;;  %s4422_s0 = inlined_call_operand.hbm [shape: f32[2,8,16], index: 0, kind: input, shape index: {}]   ;;  %s4423_s1 = inlined_call_operand.hbm [shape: f32[16,128], index: 1, kind: input, shape index: {}]   ;;  %s4424_s2 = inlined_call_operand.vmem [shape: f32[32,128], index: 2, kind: input, shape index: {}]   ;;  %s4425_s3 = inlined_call_operand.vmem [shape: f32[1,128], index: 3, kind: input, shape index: {}]   ;;  %s4426_s4 = inlined_call_operand.hbm [shape: f32[32,128], index: 4, kind: input, shape index: {}]   ;;  %s4427_s5 = inlined_call_operand.hbm [shape: f32[32,128], index: 5, kind: input, shape index: {}]   ;;  %s4428_s6 = inlined_call_operand.vmem [shape: f32[1,128], index: 6, kind: input, shape index: {}]   ;;  %s4429_s7 = inlined_call_operand.vmem [shape: f32[32,4], index: 7, kind: input, shape index: {}]   ;;  %s4430_s8 = inlined_call_operand.vmem [shape: f32[1,4], index: 8, kind: input, shape index: {}]   ;;  %s4431_s9 = inlined_call_operand.hbm [shape: f32[2,4], index: 9, kind: output, shape index: {}]  }
   0x1   :  { %15 = vsyncpa [#allocation6], 0 }
   0x2   :  { %16 = vsyncpa [#allocation9], 0 }
   0x3   :  { %17 = vsyncpa [#allocation4], 0  ;;  %s3826_s30 = smov [#allocation5]   ;;  %s3827_s11 = smov [#allocation2]  }
   0x4   :  { %s35_s10 = sshll.u32 %s3826_s30, 4  ;;  %s23_s12 = sshll.u32 %s3827_s11, 4  ;;  %s36_s10 = int_to_ptr.vmem [resolvable:$true] %s35_s10  ;;  %s3889_s12 = int_to_ptr.vmem [resolvable:$true] %s23_s12 }
   0x5   :  { %s3708_s15 = scalar_lea.hbm %s4423_s1, 256 }
   0x6   :  { %p3709_p0 = scmp.ne.s32.totalorder %s4423_s1, %s3708_s15  ;;  %p3712_p1 = scmp.lt.u32.totalorder %s3708_s15, %s4423_s1 }
   0x8   :  { %p3714_p2 = pnand %p3712_p1, %p3709_p0 }
   0xa   :  { %3717 = shalt.err (!%p3714_p2)
}
   0xb   :  { %s3718_s20 = scalar_lea.vmem %s36_s10, 256  ;;  %p3723_p4 = scmp.lt.s32.totalorder %s36_s10, %s36_s10 }
   0xc   :  { %p3719_p3 = scmp.ne.s32.totalorder %s36_s10, %s3718_s20  ;;  %p3724_p5 = scmp.lt.s32.totalorder %s3718_s20, %s3718_s20 }
   0xe   :  { %p3725_p6 = por %p3724_p5, %p3723_p4 }
  0x10   :  { %p3726_p7 = pnand %p3725_p6, %p3719_p3 }
  0x12   :  { %3729 = shalt.err (!%p3726_p7)
}
  0x13   :  { %s3828_s21 = smov 128   ;;  %s3829_s22 = smov 8  }
  0x14   :  { %41 = dma.hbm_to_vmem [thread:$0]  %s4423_s1, 256, %s36_s10, [#allocation6], %s3828_s21, %s3828_s21, %s3829_s22  }
  0x15   :  { %s3730_s27 = scalar_lea.hbm %s4422_s0, 256 }
  0x16   :  { %p3731_p8 = scmp.ne.s32.totalorder %s4422_s0, %s3730_s27  ;;  %p3734_p9 = scmp.lt.u32.totalorder %s3730_s27, %s4422_s0 }
  0x18   :  { %p3736_p10 = pnand %p3734_p9, %p3731_p8 }
  0x1a   :  { %3739 = shalt.err (!%p3736_p10)
}
  0x1b   :  { %s3740_s13 = scalar_lea.vmem %s3889_s12, 256  ;;  %p3745_p12 = scmp.lt.s32.totalorder %s3889_s12, %s3889_s12 }
  0x1c   :  { %p3741_p11 = scmp.ne.s32.totalorder %s3889_s12, %s3740_s13  ;;  %p3746_p13 = scmp.lt.s32.totalorder %s3740_s13, %s3740_s13 }
  0x1e   :  { %p3747_p0 = por %p3746_p13, %p3745_p12 }
  0x20   :  { %p3748_p1 = pnand %p3747_p0, %p3741_p11 }
  0x22   :  { %3751 = shalt.err (!%p3748_p1)
}
  0x23   :  { %29 = dma.hbm_to_vmem [thread:$0]  %s4422_s0, 256, %s3889_s12, [#allocation3], %s3828_s21, %s3828_s21, %s3829_s22  }
  0x24   :  { %s3830_s14 = smov [#allocation7]   ;;  %s3831_s16 = smov [#allocation8]  }
  0x25   :  { %s51_s15 = sshll.u32 %s3830_s14, 4  ;;  %s63_s17 = sshll.u32 %s3831_s16, 4  ;;  %s52_s15 = int_to_ptr.vmem [resolvable:$true] %s51_s15  ;;  %s3926_s17 = int_to_ptr.vmem [resolvable:$true] %s63_s17 }
  0x26   :  { %s3752_s20 = scalar_lea.hbm %s4426_s4, 512 }
  0x27   :  { %p3753_p2 = scmp.ne.s32.totalorder %s4426_s4, %s3752_s20  ;;  %p3756_p3 = scmp.lt.u32.totalorder %s3752_s20, %s4426_s4 }
  0x29   :  { %p3758_p4 = pnand %p3756_p3, %p3753_p2 }
  0x2b   :  { %3761 = shalt.err (!%p3758_p4)
}
  0x2c   :  { %s3762_s0 = scalar_lea.vmem %s52_s15, 512  ;;  %p3767_p6 = scmp.lt.s32.totalorder %s52_s15, %s52_s15 }
  0x2d   :  { %p3763_p5 = scmp.ne.s32.totalorder %s52_s15, %s3762_s0  ;;  %p3768_p7 = scmp.lt.s32.totalorder %s3762_s0, %s3762_s0 }
  0x2f   :  { %p3769_p8 = por %p3768_p7, %p3767_p6 }
  0x31   :  { %p3770_p9 = pnand %p3769_p8, %p3763_p5 }
  0x33   :  { %3773 = shalt.err (!%p3770_p9)
}
  0x34   :  { %57 = dma.hbm_to_vmem [thread:$0]  %s4426_s4, 512, %s52_s15, [#allocation6], %s3828_s21, %s3828_s21, %s3829_s22  }
  0x35   :  { %s3774_s30 = scalar_lea.hbm %s4427_s5, 512 }
  0x36   :  { %p3775_p10 = scmp.ne.s32.totalorder %s4427_s5, %s3774_s30  ;;  %p3778_p11 = scmp.lt.u32.totalorder %s3774_s30, %s4427_s5 }
  0x38   :  { %p3780_p12 = pnand %p3778_p11, %p3775_p10 }
  0x3a   :  { %3783 = shalt.err (!%p3780_p12)
}
  0x3b   :  { %s3784_s14 = scalar_lea.vmem %s3926_s17, 512  ;;  %p3789_p0 = scmp.lt.s32.totalorder %s3926_s17, %s3926_s17 }
  0x3c   :  { %p3785_p13 = scmp.ne.s32.totalorder %s3926_s17, %s3784_s14  ;;  %p3790_p1 = scmp.lt.s32.totalorder %s3784_s14, %s3784_s14 }
  0x3e   :  { %p3791_p2 = por %p3790_p1, %p3789_p0 }
  0x40   :  { %p3792_p3 = pnand %p3791_p2, %p3785_p13 }
  0x42   :  { %3795 = shalt.err (!%p3792_p3)
}
  0x43   :  { %69 = dma.hbm_to_vmem [thread:$0]  %s4427_s5, 512, %s3926_s17, [#allocation9], %s3828_s21, %s3828_s21, %s3829_s22  }
  0x44   :  { %3818 = dma.done.wait [#allocation3], 256  }
  0x45   :  { %3819 = vsyncadd [#allocation3], 4294967040 }
  0x46   :  { %3820 = dma.done.wait [#allocation6], 768  }
  0x47   :  { %3821 = vsyncadd [#allocation6], 4294966528 }
  0x48   :  { %3822 = dma.done.wait [#allocation9], 512  }
  0x49   :  { %3823 = vsyncadd [#allocation9], 4294966784  ;;  %v88_v0 = vlaneseq  ;;  %v3832_v1 = vmov 0.0|0.0   ;;  %vm3833_vm0 = vmmov 0   ;;  %v3834_v3 = vmov 0.0   ;;  %v106_v6 = vld [vmem:[%s4424_s2] sm:$0xff] }
  0x4a   :  { %3455 = vmatprep.subr.bf16.mxu0 %v3832_v1  ;;  %3461 = vmatprep.subr.bf16.mxu1 %v3832_v1  ;;  %v3835_v4 = vmov 0.5   ;;  %v107_v7 = vld [vmem:[%s4424_s2 + $0x8] sm:$0xff]  ;;  %v94_v8 = vld [vmem:[#allocation5] sm:$0xff]  ;;  %v95_v11 = vld [vmem:[#allocation5 + $0x8] sm:$0xff]  ;;  %vm205_vm4 = vcmask 1041409   ;;  %vm207_vm5 = vcmask 130048  }
  0x4b   :  { %v89_v2 = vand.u32 127, %v88_v0  ;;  %3139 = vmatprep.mubr.msk.f32.mxu1 %vm3833_vm0, %v3834_v3  ;;  %3132 = vmatprep.mubr.msk.f32.mxu0 %vm3833_vm0, %v3834_v3  ;;  %v108_v13 = vld [vmem:[%s4424_s2 + $0x10] sm:$0xff]  ;;  %v109_v14 = vld [vmem:[%s4424_s2 + $0x18] sm:$0xff]  ;;  %v3989_v18 = vld [vmem:[#allocation2 + $0x8] sm:$0xff]  ;;  %v4014_v25 = vshrl.u32 %v88_v0, 7  ;;  %s3836_s24 = smov 64  }
  0x4c   :  { %v3993_v20 = vld [vmem:[#allocation2] sm:$0xff]  ;;  %v204_v21 = vrot.slane %v3989_v18, 7  ;;  %v115_v45 = vld [vmem:[#allocation8 + $0x8] sm:$0xff]  ;;  %v116_v46 = vld [vmem:[#allocation8 + $0x10] sm:$0xff]  ;;  %vm128_vm6 = vcmask 261120   ;;  %vm2924_vm7 = vcmask 25600  }
  0x4d   :  { %vm90_vm1 = vcmp.ge.s32.totalorder %v89_v2, 64  ;;  %vm91_vm2 = vcmp.lt.s32.totalorder %v89_v2, 96  ;;  %v122_v26 = vld [vmem:[%s4425_s3] sm:$0x1]  ;;  %v283_v28 = vsub.s32 0, %v4014_v25  ;;  %s3837_s3 = smov 32  }
  0x4e   :  { %vm92_vm3 = vmand %vm90_vm1, %vm91_vm2  ;;  %v206_v24 = vsel %vm205_vm4, %v204_v21, %v3993_v20  ;;  %v114_v44 = vld [vmem:[#allocation8] sm:$0xff]  ;;  %v117_v49 = vld [vmem:[#allocation8 + $0x18] sm:$0xff] }
  0x4f   :  { %v3969_v5 = vsel %vm92_vm3, 1.0, %v3835_v4  ;;  %v98_v51 = vld [vmem:[#allocation7] sm:$0xff]  ;;  %v99_v52 = vld [vmem:[#allocation7 + $0x8] sm:$0xff]  ;;  %v100_v56 = vld [vmem:[#allocation7 + $0x10] sm:$0xff] }
  0x50   :  { %v110_v9 = vmul.f32 %v106_v6, %v3969_v5  ;;  %v111_v10 = vmul.f32 %v107_v7, %v3969_v5  ;;  %v96_v12 = vmul.f32 %v94_v8, %v3969_v5  ;;  %v97_v15 = vmul.f32 %v95_v11, %v3969_v5  ;;  %v101_v57 = vld [vmem:[#allocation7 + $0x18] sm:$0xff]  ;;  %v124_v11 = vld [vmem:[%s4428_s6] sm:$0x1] }
  0x51   :  { %v112_v16 = vmul.f32 %v108_v13, %v3969_v5  ;;  %v113_v17 = vmul.f32 %v109_v14, %v3969_v5  ;;  %v123_v27 = vmul.f32 %v122_v26, %v3969_v5  ;;  %v118_v47 = vmul.f32 %v114_v44, %v3969_v5 }
  0x52   :  { %v3991_v19 = vpack.c.bf16 %v111_v10, %v110_v9  ;;  %v3996_v22 = vpack.c.bf16 %v97_v15, %v96_v12  ;;  %v119_v48 = vmul.f32 %v115_v45, %v3969_v5  ;;  %v120_v50 = vmul.f32 %v116_v46, %v3969_v5 }
  0x53   :  { %v3999_v23 = vpack.c.bf16 %v113_v17, %v112_v16  ;;  %v4023_v31 = vrot.slane %v123_v27, %v283_v28  ;;  %v121_v53 = vmul.f32 %v117_v49, %v3969_v5  ;;  %v102_v54 = vmul.f32 %v98_v51, %v3969_v5 }
  0x54   :  { %3457 = vmatpush3.bf16.msra.mxu0 %v3991_v19  ;;  %3463 = vmatpush3.bf16.msra.mxu1 %v3996_v22  ;;  %v103_v55 = vmul.f32 %v99_v52, %v3969_v5  ;;  %v4037_v58 = vpack.c.bf16 %v119_v48, %v118_v47  ;;  %v104_v59 = vmul.f32 %v100_v56, %v3969_v5  ;;  %v549_v8 = vrot.slane %v3993_v20, 1 }
  0x55   :  { %3458 = vmatprep.subr.bf16.mxu0 %v3832_v1  ;;  %3464 = vmatprep.subr.bf16.mxu1 %v3832_v1  ;;  %v105_v60 = vmul.f32 %v101_v57, %v3969_v5  ;;  %v4044_v62 = vpack.c.bf16 %v121_v53, %v120_v50  ;;  %v125_v12 = vmul.f32 %v124_v11, %v3969_v5  ;;  %v885_v52 = vrot.slane %v3993_v20, 2 }
  0x56   :  { %v4041_v61 = vpack.c.bf16 %v103_v55, %v102_v54  ;;  %v550_v10 = vsel %vm205_vm4, %v3989_v18, %v549_v8  ;;  %v886_v53 = vrot.slane %v3989_v18, 1 }
  0x57   :  { %3140 = vmatmul.mubr.msk.f32.vlgmr.msra.gmra.mrb[0].mxu1 %vm207_vm5, %v206_v24  ;;  %v4048_v63 = vpack.c.bf16 %v105_v60, %v104_v59  ;;  %v4092_v13 = vrot.slane %v125_v12, %v283_v28 }
  0x58   :  { %3460 = vmatpush3.bf16.msra.mxu0 %v3999_v23  ;;  %3150 = vmatprep.mubr.msk.f32.mxu1 %vm3833_vm0, %v3834_v3  ;;  %v887_v55 = vsel %vm205_vm4, %v886_v53, %v885_v52 }
  0x59   :  { %3470 = vmatprep.subr.bf16.mxu0 %v3832_v1  ;;  %3466 = vmatpush3.bf16.msra.mxu1 %v4037_v58 }
  0x5a   :  { %3467 = vmatprep.subr.bf16.mxu1 %v3832_v1 }
  0x5b   :  { %3133 = vmatmul.mubr.f32.vlgmr.msra.gmra.mrb[0].mxu0 %v3834_v3 }
  0x5c   :  { %3161 = vmatprep.mubr.msk.f32.mxu0 %vm3833_vm0, %v3834_v3  ;;  %3472 = vmatpush3.bf16.msra.mxu0 %v4041_v61 }
  0x5d   :  { %3473 = vmatprep.subr.bf16.mxu0 %v3832_v1  ;;  %3469 = vmatpush3.bf16.msra.mxu1 %v4044_v62 }
  0x5e   :  { %3476 = vmatprep.subr.bf16.mxu1 %v3832_v1 }
  0x60   :  { %3475 = vmatpush3.bf16.msra.mxu0 %v4048_v63  ;;  %3151 = vmatmul.mubr.f32.vlgmr.msra.gmra.mrb[2].mxu1 %v3834_v3 }
  0x61   :  { %3485 = vmatprep.subr.bf16.mxu0 %v3832_v1  ;;  %3478 = vmatpush3.bf16.msra.mxu1 %v3991_v19 }
  0x62   :  { %3172 = vmatprep.mubr.msk.f32.mxu1 %vm3833_vm0, %v3834_v3  ;;  %3479 = vmatprep.subr.bf16.mxu1 %v3832_v1 }
  0x65   :  { %3481 = vmatpush3.bf16.msra.mxu1 %v3999_v23 }
  0x66   :  { %3482 = vmatprep.subr.bf16.mxu1 %v3832_v1 }
 0x12a   :  { %v276_v29 = vpop.f32.mrb[0].mxu1 }
 0x12b   :  { %v3141_v30 = vpop.f32.mrb[1].mxu1 }
 0x12e   :  { %v198_v32 = vpop.f32.mrb[0].mxu0 }
 0x12f   :  { %v277_v33 = vadd.f32 %v276_v29, %v198_v32  ;;  %v3134_v34 = vpop.f32.mrb[1].mxu0 }
 0x131   :  { %v286_v35 = vadd.f32 %v4023_v31, %v277_v33 }
 0x133   :  { %3642 = vtanh.f32 %v286_v35  ;;  %v373_v6 = vpop.f32.mrb[2].mxu1 }
 0x134   :  { %v3152_v7 = vpop.f32.mrb[3].mxu1 }
 0x13d   :  { %v3643_v36 = vpop.eup %3642 }
 0x13e   :  { %292 = vrot.lane.b32.xlu0 %v3643_v36, %s3836_s24  ;;  %v288_v37 = vadd.f32 1.0, %v3643_v36 }
 0x140   :  { %v289_v38 = vmul.f32 0.5, %v288_v37 }
 0x142   :  { %v290_v41 = vmul.f32 0.0, %v289_v38 }
 0x1b0   :  { %v293_v39 = vpop.permute.xlu0 %292 }
 0x1b1   :  { %v295_v40 = vmul.f32 %v293_v39, %v289_v38 }
 0x1b3   :  { %297 = vrot.lane.b32.xlu0 %v295_v40, %s3837_s3 }
 0x225   :  { %v298_v42 = vpop.permute.xlu0 %297 }
 0x226   :  { %v4028_v43 = vadd.f32 %v298_v42, %v290_v41 }
 0x228   :  { %3644 = vtanh.f32 %v4028_v43 }
 0x232   :  { %v3645_v0 = vpop.eup %3644 }
 0x233   :  { %303 = vrot.lane.b32.xlu1 %v3645_v0, %s3836_s24 }
 0x2a5   :  { %v304_v2 = vpop.permute.xlu1 %303 }
 0x2a6   :  { %v306_v4 = vmul.f32 %v304_v2, %v289_v38 }
 0x2a8   :  { %378 = vrot.lane.b32.xlu1 %v306_v4, %s3837_s3 }
 0x31a   :  { %v379_v9 = vpop.permute.xlu1 %378 }
 0x31b   :  { %3162 = vmatmul.mubr.msk.f32.vlgmr.msra.gmra.mrb[2].mxu0 %vm128_vm6, %v379_v9  ;;  %3173 = vmatmul.mubr.msk.f32.vlgmr.msra.gmra.mrb[4].mxu1 %vm128_vm6, %v379_v9 }
 0x31c   :  { %3484 = vmatpush3.bf16.msra.mxu1 %v3996_v22  ;;  %3179 = vmatprep.mubr.msk.f32.mxu1 %vm3833_vm0, %v3834_v3 }
 0x31d   :  { %3487 = vmatpush3.bf16.msra.mxu0 %v4037_v58  ;;  %3491 = vmatprep.subr.bf16.mxu1 %v3832_v1 }
 0x31e   :  { %3488 = vmatprep.subr.bf16.mxu0 %v3832_v1  ;;  %3190 = vmatprep.mubr.msk.f32.mxu0 %vm3833_vm0, %v3834_v3 }
 0x31f   :  { %3180 = vmatmul.mubr.msk.f32.vlgmr.msra.gmra.mrb[6].mxu1 %vm207_vm5, %v550_v10 }
 0x320   :  { %3493 = vmatpush3.bf16.msra.mxu1 %v4041_v61  ;;  %3201 = vmatprep.mubr.msk.f32.mxu1 %vm3833_vm0, %v3834_v3 }
 0x321   :  { %3490 = vmatpush3.bf16.msra.mxu0 %v4044_v62  ;;  %3494 = vmatprep.subr.bf16.mxu1 %v3832_v1 }
 0x322   :  { %3497 = vmatprep.subr.bf16.mxu0 %v3832_v1 }
 0x324   :  { %3496 = vmatpush3.bf16.msra.mxu1 %v4048_v63 }
 0x325   :  { %3503 = vmatprep.subr.bf16.mxu1 %v3832_v1 }
 0x3ee   :  { %v448_v14 = vpop.f32.mrb[2].mxu0  ;;  %v545_v15 = vpop.f32.mrb[4].mxu1 }
 0x3ef   :  { %v449_v16 = vadd.f32 %v448_v14, %v373_v6  ;;  %v3163_v17 = vpop.f32.mrb[3].mxu0  ;;  %v3174_v21 = vpop.f32.mrb[5].mxu1 }
 0x3f1   :  { %v458_v24 = vadd.f32 %v4092_v13, %v449_v16 }
 0x3f2   :  { %v619_v26 = vpop.f32.mrb[6].mxu1 }
 0x3f3   :  { %3646 = vtanh.f32 %v458_v24  ;;  %v620_v27 = vadd.f32 %v619_v26, %v545_v15  ;;  %v3181_v29 = vpop.f32.mrb[7].mxu1 }
 0x3f5   :  { %v623_v30 = vadd.f32 %v620_v27, %v4023_v31 }
 0x3f7   :  { %3648 = vtanh.f32 %v623_v30 }
 0x3fd   :  { %v3647_v32 = vpop.eup %3646 }
 0x3fe   :  { %464 = vrot.lane.b32.xlu0 %v3647_v32, %s3836_s24  ;;  %v460_v25 = vadd.f32 1.0, %v3647_v32 }
 0x400   :  { %v461_v28 = vmul.f32 0.5, %v460_v25 }
 0x401   :  { %v3649_v5 = vpop.eup %3648 }
 0x402   :  { %629 = vrot.lane.b32.xlu1 %v3649_v5, %s3836_s24  ;;  %v625_v33 = vadd.f32 1.0, %v3649_v5  ;;  %v462_v39 = vmul.f32 0.0, %v461_v28 }
 0x404   :  { %v626_v36 = vmul.f32 0.5, %v625_v33 }
 0x406   :  { %v627_v42 = vmul.f32 %v626_v36, %v4028_v43 }
 0x470   :  { %v465_v34 = vpop.permute.xlu0 %464 }
 0x471   :  { %v467_v35 = vmul.f32 %v465_v34, %v461_v28 }
 0x473   :  { %469 = vrot.lane.b32.xlu0 %v467_v35, %s3837_s3 }
 0x474   :  { %v630_v37 = vpop.permute.xlu1 %629 }
 0x475   :  { %v632_v38 = vmul.f32 %v630_v37, %v626_v36 }
 0x477   :  { %634 = vrot.lane.b32.xlu1 %v632_v38, %s3837_s3 }
 0x4e5   :  { %v470_v40 = vpop.permute.xlu0 %469 }
 0x4e6   :  { %v4100_v41 = vadd.f32 %v470_v40, %v462_v39  ;;  %v1222_v40 = vrot.slane %v3993_v20, 3 }
 0x4e8   :  { %3650 = vtanh.f32 %v4100_v41 }
 0x4e9   :  { %v635_v44 = vpop.permute.xlu1 %634 }
 0x4ea   :  { %v4104_v45 = vadd.f32 %v635_v44, %v627_v42 }
 0x4ec   :  { %3652 = vtanh.f32 %v4104_v45 }
 0x4f2   :  { %v3651_v46 = vpop.eup %3650 }
 0x4f3   :  { %475 = vrot.lane.b32.xlu0 %v3651_v46, %s3836_s24 }
 0x4f6   :  { %v3653_v47 = vpop.eup %3652 }
 0x4f7   :  { %640 = vrot.lane.b32.xlu1 %v3653_v47, %s3836_s24 }
 0x565   :  { %v476_v48 = vpop.permute.xlu0 %475 }
 0x566   :  { %v478_v49 = vmul.f32 %v476_v48, %v461_v28 }
 0x568   :  { %645 = vrot.lane.b32.xlu0 %v478_v49, %s3837_s3 }
 0x569   :  { %v641_v50 = vpop.permute.xlu1 %640 }
 0x56a   :  { %v643_v51 = vmul.f32 %v641_v50, %v626_v36 }
 0x56c   :  { %720 = vrot.lane.b32.xlu1 %v643_v51, %s3837_s3 }
 0x5da   :  { %v646_v43 = vpop.permute.xlu0 %645 }
 0x5db   :  { %3191 = vmatmul.mubr.msk.f32.vlgmr.msra.gmra.mrb[4].mxu0 %vm128_vm6, %v646_v43 }
 0x5dc   :  { %3499 = vmatpush3.bf16.msra.mxu0 %v3991_v19  ;;  %3212 = vmatprep.mubr.msk.f32.mxu0 %vm3833_vm0, %v3834_v3 }
 0x5dd   :  { %3500 = vmatprep.subr.bf16.mxu0 %v3832_v1 }
 0x5de   :  { %v721_v54 = vpop.permute.xlu1 %720 }
 0x5df   :  { %3202 = vmatmul.mubr.msk.f32.vlgmr.msra.gmra.mrb[8].mxu1 %vm128_vm6, %v721_v54 }
 0x5e0   :  { %3502 = vmatpush3.bf16.msra.mxu0 %v3999_v23  ;;  %3505 = vmatpush3.bf16.msra.mxu1 %v3996_v22 }
 0x5e1   :  { %3219 = vmatprep.mubr.msk.f32.mxu1 %vm3833_vm0, %v3834_v3  ;;  %3506 = vmatprep.subr.bf16.mxu1 %v3832_v1 }
 0x5e2   :  { %3512 = vmatprep.subr.bf16.mxu0 %v3832_v1 }
 0x5e3   :  { %3213 = vmatmul.mubr.msk.f32.vlgmr.msra.gmra.mrb[6].mxu0 %vm128_vm6, %v721_v54  ;;  %3220 = vmatmul.mubr.msk.f32.vlgmr.msra.gmra.mrb[10].mxu1 %vm207_vm5, %v887_v55 }
 0x5e4   :  { %3508 = vmatpush3.bf16.msra.mxu1 %v4037_v58  ;;  %3514 = vmatpush3.bf16.msra.mxu0 %v4041_v61 }
 0x5e5   :  { %3509 = vmatprep.subr.bf16.mxu1 %v3832_v1  ;;  %3230 = vmatprep.mubr.msk.f32.mxu1 %vm3833_vm0, %v3834_v3 }
 0x5e6   :  { %3515 = vmatprep.subr.bf16.mxu0 %v3832_v1  ;;  %3241 = vmatprep.mubr.msk.f32.mxu0 %vm3833_vm0, %v3834_v3 }
 0x5e8   :  { %3511 = vmatpush3.bf16.msra.mxu1 %v4044_v62  ;;  %3517 = vmatpush3.bf16.msra.mxu0 %v4048_v63 }
 0x5e9   :  { %3518 = vmatprep.subr.bf16.mxu1 %v3832_v1  ;;  %3524 = vmatprep.subr.bf16.mxu0 %v3832_v1 }
 0x6ae   :  { %v715_v56 = vpop.f32.mrb[4].mxu0 }
 0x6af   :  { %v3192_v57 = vpop.f32.mrb[5].mxu0 }
 0x6b2   :  { %v790_v59 = vpop.f32.mrb[8].mxu1 }
 0x6b3   :  { %v791_v60 = vadd.f32 %v790_v59, %v715_v56  ;;  %v3203_v0 = vpop.f32.mrb[9].mxu1 }
 0x6b5   :  { %v794_v2 = vadd.f32 %v791_v60, %v4092_v13 }
 0x6b6   :  { %v881_v4 = vpop.f32.mrb[6].mxu0  ;;  %v956_v6 = vpop.f32.mrb[10].mxu1 }
 0x6b7   :  { %3654 = vtanh.f32 %v794_v2  ;;  %v3214_v7 = vpop.f32.mrb[7].mxu0  ;;  %v957_v8 = vadd.f32 %v956_v6, %v881_v4  ;;  %v3221_v9 = vpop.f32.mrb[11].mxu1 }
 0x6b9   :  { %v960_v10 = vadd.f32 %v957_v8, %v4023_v31 }
 0x6bb   :  { %3656 = vtanh.f32 %v960_v10 }
 0x6c1   :  { %v3655_v11 = vpop.eup %3654 }
 0x6c2   :  { %800 = vrot.lane.b32.xlu0 %v3655_v11, %s3836_s24  ;;  %v796_v14 = vadd.f32 1.0, %v3655_v11 }
 0x6c4   :  { %v797_v15 = vmul.f32 0.5, %v796_v14 }
 0x6c5   :  { %v3657_v12 = vpop.eup %3656 }
 0x6c6   :  { %966 = vrot.lane.b32.xlu1 %v3657_v12, %s3836_s24  ;;  %v962_v16 = vadd.f32 1.0, %v3657_v12  ;;  %v798_v29 = vmul.f32 %v797_v15, %v4100_v41  ;;  %v1223_v41 = vrot.slane %v3989_v18, 2 }
 0x6c8   :  { %v963_v24 = vmul.f32 0.5, %v962_v16  ;;  %v1224_v44 = vsel %vm205_vm4, %v1223_v41, %v1222_v40 }
 0x6ca   :  { %v964_v5 = vmul.f32 %v963_v24, %v4104_v45 }
 0x734   :  { %v801_v17 = vpop.permute.xlu0 %800 }
 0x735   :  { %v803_v21 = vmul.f32 %v801_v17, %v797_v15 }
 0x737   :  { %805 = vrot.lane.b32.xlu0 %v803_v21, %s3837_s3 }
 0x738   :  { %v967_v26 = vpop.permute.xlu1 %966 }
 0x739   :  { %v969_v27 = vmul.f32 %v967_v26, %v963_v24 }
 0x73b   :  { %971 = vrot.lane.b32.xlu1 %v969_v27, %s3837_s3 }
 0x7a9   :  { %v806_v30 = vpop.permute.xlu0 %805 }
 0x7aa   :  { %v4147_v32 = vadd.f32 %v806_v30, %v798_v29  ;;  %v1559_v30 = vrot.slane %v3993_v20, 4 }
 0x7ac   :  { %3658 = vtanh.f32 %v4147_v32 }
 0x7ad   :  { %v972_v25 = vpop.permute.xlu1 %971 }
 0x7ae   :  { %v4151_v28 = vadd.f32 %v972_v25, %v964_v5 }
 0x7b0   :  { %3660 = vtanh.f32 %v4151_v28 }
 0x7b6   :  { %v3659_v33 = vpop.eup %3658 }
 0x7b7   :  { %811 = vrot.lane.b32.xlu0 %v3659_v33, %s3836_s24 }
 0x7ba   :  { %v3661_v34 = vpop.eup %3660 }
 0x7bb   :  { %977 = vrot.lane.b32.xlu1 %v3661_v34, %s3836_s24 }
 0x829   :  { %v812_v35 = vpop.permute.xlu0 %811 }
 0x82a   :  { %v814_v36 = vmul.f32 %v812_v35, %v797_v15 }
 0x82c   :  { %982 = vrot.lane.b32.xlu0 %v814_v36, %s3837_s3 }
 0x82d   :  { %v978_v37 = vpop.permute.xlu1 %977 }
 0x82e   :  { %v980_v38 = vmul.f32 %v978_v37, %v963_v24 }
 0x830   :  { %1057 = vrot.lane.b32.xlu1 %v980_v38, %s3837_s3 }
 0x89e   :  { %v983_v39 = vpop.permute.xlu0 %982 }
 0x89f   :  { %3231 = vmatmul.mubr.msk.f32.vlgmr.msra.gmra.mrb[12].mxu1 %vm128_vm6, %v983_v39 }
 0x8a0   :  { %3520 = vmatpush3.bf16.msra.mxu1 %v3991_v19  ;;  %3252 = vmatprep.mubr.msk.f32.mxu1 %vm3833_vm0, %v3834_v3 }
 0x8a1   :  { %3521 = vmatprep.subr.bf16.mxu1 %v3832_v1 }
 0x8a2   :  { %v1058_v42 = vpop.permute.xlu1 %1057 }
 0x8a3   :  { %3242 = vmatmul.mubr.msk.f32.vlgmr.msra.gmra.mrb[8].mxu0 %vm128_vm6, %v1058_v42 }
 0x8a4   :  { %3523 = vmatpush3.bf16.msra.mxu1 %v3999_v23  ;;  %3526 = vmatpush3.bf16.msra.mxu0 %v3996_v22 }
 0x8a5   :  { %3259 = vmatprep.mubr.msk.f32.mxu0 %vm3833_vm0, %v3834_v3  ;;  %3527 = vmatprep.subr.bf16.mxu0 %v3832_v1 }
 0x8a6   :  { %3533 = vmatprep.subr.bf16.mxu1 %v3832_v1 }
 0x8a7   :  { %3253 = vmatmul.mubr.msk.f32.vlgmr.msra.gmra.mrb[14].mxu1 %vm128_vm6, %v1058_v42  ;;  %3260 = vmatmul.mubr.msk.f32.vlgmr.msra.gmra.mrb[10].mxu0 %vm207_vm5, %v1224_v44 }
 0x8a8   :  { %3529 = vmatpush3.bf16.msra.mxu0 %v4037_v58  ;;  %3535 = vmatpush3.bf16.msra.mxu1 %v4041_v61 }
 0x8a9   :  { %3530 = vmatprep.subr.bf16.mxu0 %v3832_v1  ;;  %3270 = vmatprep.mubr.msk.f32.mxu0 %vm3833_vm0, %v3834_v3 }
 0x8aa   :  { %3536 = vmatprep.subr.bf16.mxu1 %v3832_v1  ;;  %3281 = vmatprep.mubr.msk.f32.mxu1 %vm3833_vm0, %v3834_v3 }
 0x8ac   :  { %3532 = vmatpush3.bf16.msra.mxu0 %v4044_v62  ;;  %3538 = vmatpush3.bf16.msra.mxu1 %v4048_v63 }
 0x8ad   :  { %3539 = vmatprep.subr.bf16.mxu0 %v3832_v1  ;;  %3545 = vmatprep.subr.bf16.mxu1 %v3832_v1 }
 0x972   :  { %v1052_v45 = vpop.f32.mrb[12].mxu1 }
 0x973   :  { %v3232_v46 = vpop.f32.mrb[13].mxu1 }
 0x976   :  { %v1127_v47 = vpop.f32.mrb[8].mxu0 }
 0x977   :  { %v1128_v48 = vadd.f32 %v1127_v47, %v1052_v45  ;;  %v3243_v49 = vpop.f32.mrb[9].mxu0 }
 0x979   :  { %v1131_v50 = vadd.f32 %v1128_v48, %v4092_v13 }
 0x97a   :  { %v1218_v51 = vpop.f32.mrb[14].mxu1  ;;  %v1293_v43 = vpop.f32.mrb[10].mxu0 }
 0x97b   :  { %3662 = vtanh.f32 %v1131_v50  ;;  %v3254_v52 = vpop.f32.mrb[15].mxu1  ;;  %v1294_v53 = vadd.f32 %v1293_v43, %v1218_v51  ;;  %v3261_v54 = vpop.f32.mrb[11].mxu0 }
 0x97d   :  { %v1297_v55 = vadd.f32 %v1294_v53, %v4023_v31 }
 0x97f   :  { %3664 = vtanh.f32 %v1297_v55 }
 0x985   :  { %v3663_v56 = vpop.eup %3662 }
 0x986   :  { %1137 = vrot.lane.b32.xlu0 %v3663_v56, %s3836_s24  ;;  %v1133_v59 = vadd.f32 1.0, %v3663_v56 }
 0x988   :  { %v1134_v60 = vmul.f32 0.5, %v1133_v59 }
 0x989   :  { %v3665_v57 = vpop.eup %3664 }
 0x98a   :  { %1303 = vrot.lane.b32.xlu1 %v3665_v57, %s3836_s24  ;;  %v1299_v0 = vadd.f32 1.0, %v3665_v57  ;;  %v1135_v9 = vmul.f32 %v1134_v60, %v4147_v32  ;;  %v1560_v32 = vrot.slane %v3989_v18, 3 }
 0x98c   :  { %v1300_v6 = vmul.f32 0.5, %v1299_v0  ;;  %v1561_v25 = vsel %vm205_vm4, %v1560_v32, %v1559_v30 }
 0x98e   :  { %v1301_v12 = vmul.f32 %v1300_v6, %v4151_v28 }
 0x9f8   :  { %v1138_v2 = vpop.permute.xlu0 %1137 }
 0x9f9   :  { %v1140_v4 = vmul.f32 %v1138_v2, %v1134_v60 }
 0x9fb   :  { %1142 = vrot.lane.b32.xlu0 %v1140_v4, %s3837_s3 }
 0x9fc   :  { %v1304_v7 = vpop.permute.xlu1 %1303 }
 0x9fd   :  { %v1306_v8 = vmul.f32 %v1304_v7, %v1300_v6 }
 0x9ff   :  { %1308 = vrot.lane.b32.xlu1 %v1306_v8, %s3837_s3 }
 0xa6d   :  { %v1143_v10 = vpop.permute.xlu0 %1142 }
 0xa6e   :  { %v4194_v11 = vadd.f32 %v1143_v10, %v1135_v9  ;;  %v1896_v10 = vrot.slane %v3993_v20, 5 }
 0xa70   :  { %3666 = vtanh.f32 %v4194_v11 }
 0xa71   :  { %v1309_v14 = vpop.permute.xlu1 %1308 }
 0xa72   :  { %v4198_v15 = vadd.f32 %v1309_v14, %v1301_v12 }
 0xa74   :  { %3668 = vtanh.f32 %v4198_v15 }
 0xa7a   :  { %v3667_v16 = vpop.eup %3666 }
 0xa7b   :  { %1148 = vrot.lane.b32.xlu0 %v3667_v16, %s3836_s24 }
 0xa7e   :  { %v3669_v17 = vpop.eup %3668 }
 0xa7f   :  { %1314 = vrot.lane.b32.xlu1 %v3669_v17, %s3836_s24 }
 0xaed   :  { %v1149_v21 = vpop.permute.xlu0 %1148 }
 0xaee   :  { %v1151_v24 = vmul.f32 %v1149_v21, %v1134_v60 }
 0xaf0   :  { %1319 = vrot.lane.b32.xlu0 %v1151_v24, %s3837_s3 }
 0xaf1   :  { %v1315_v26 = vpop.permute.xlu1 %1314 }
 0xaf2   :  { %v1317_v27 = vmul.f32 %v1315_v26, %v1300_v6 }
 0xaf4   :  { %1394 = vrot.lane.b32.xlu1 %v1317_v27, %s3837_s3 }
 0xb62   :  { %v1320_v29 = vpop.permute.xlu0 %1319 }
 0xb63   :  { %3271 = vmatmul.mubr.msk.f32.vlgmr.msra.gmra.mrb[12].mxu0 %vm128_vm6, %v1320_v29 }
 0xb64   :  { %3541 = vmatpush3.bf16.msra.mxu0 %v3991_v19  ;;  %3292 = vmatprep.mubr.msk.f32.mxu0 %vm3833_vm0, %v3834_v3 }
 0xb65   :  { %3542 = vmatprep.subr.bf16.mxu0 %v3832_v1 }
 0xb66   :  { %v1395_v5 = vpop.permute.xlu1 %1394 }
 0xb67   :  { %3282 = vmatmul.mubr.msk.f32.vlgmr.msra.gmra.mrb[16].mxu1 %vm128_vm6, %v1395_v5 }
 0xb68   :  { %3544 = vmatpush3.bf16.msra.mxu0 %v3999_v23  ;;  %3547 = vmatpush3.bf16.msra.mxu1 %v3996_v22 }
 0xb69   :  { %3299 = vmatprep.mubr.msk.f32.mxu1 %vm3833_vm0, %v3834_v3  ;;  %3548 = vmatprep.subr.bf16.mxu1 %v3832_v1 }
 0xb6a   :  { %3554 = vmatprep.subr.bf16.mxu0 %v3832_v1 }
 0xb6b   :  { %3293 = vmatmul.mubr.msk.f32.vlgmr.msra.gmra.mrb[14].mxu0 %vm128_vm6, %v1395_v5  ;;  %3300 = vmatmul.mubr.msk.f32.vlgmr.msra.gmra.mrb[18].mxu1 %vm207_vm5, %v1561_v25 }
 0xb6c   :  { %3550 = vmatpush3.bf16.msra.mxu1 %v4037_v58  ;;  %3556 = vmatpush3.bf16.msra.mxu0 %v4041_v61 }
 0xb6d   :  { %3551 = vmatprep.subr.bf16.mxu1 %v3832_v1  ;;  %3310 = vmatprep.mubr.msk.f32.mxu1 %vm3833_vm0, %v3834_v3 }
 0xb6e   :  { %3557 = vmatprep.subr.bf16.mxu0 %v3832_v1  ;;  %3321 = vmatprep.mubr.msk.f32.mxu0 %vm3833_vm0, %v3834_v3 }
 0xb70   :  { %3553 = vmatpush3.bf16.msra.mxu1 %v4044_v62  ;;  %3559 = vmatpush3.bf16.msra.mxu0 %v4048_v63 }
 0xb71   :  { %3560 = vmatprep.subr.bf16.mxu1 %v3832_v1  ;;  %3566 = vmatprep.subr.bf16.mxu0 %v3832_v1 }
 0xc36   :  { %v1389_v28 = vpop.f32.mrb[12].mxu0 }
 0xc37   :  { %v3272_v33 = vpop.f32.mrb[13].mxu0 }
 0xc3a   :  { %v1464_v34 = vpop.f32.mrb[16].mxu1 }
 0xc3b   :  { %v1465_v35 = vadd.f32 %v1464_v34, %v1389_v28  ;;  %v3283_v36 = vpop.f32.mrb[17].mxu1 }
 0xc3d   :  { %v1468_v37 = vadd.f32 %v1465_v35, %v4092_v13 }
 0xc3e   :  { %v1555_v38 = vpop.f32.mrb[14].mxu0  ;;  %v1630_v39 = vpop.f32.mrb[18].mxu1 }
 0xc3f   :  { %3670 = vtanh.f32 %v1468_v37  ;;  %v3294_v40 = vpop.f32.mrb[15].mxu0  ;;  %v1631_v41 = vadd.f32 %v1630_v39, %v1555_v38  ;;  %v3301_v42 = vpop.f32.mrb[19].mxu1 }
 0xc41   :  { %v1634_v44 = vadd.f32 %v1631_v41, %v4023_v31 }
 0xc43   :  { %3672 = vtanh.f32 %v1634_v44 }
 0xc49   :  { %v3671_v45 = vpop.eup %3670 }
 0xc4a   :  { %1474 = vrot.lane.b32.xlu0 %v3671_v45, %s3836_s24  ;;  %v1470_v47 = vadd.f32 1.0, %v3671_v45 }
 0xc4c   :  { %v1471_v48 = vmul.f32 0.5, %v1470_v47 }
 0xc4d   :  { %v3673_v46 = vpop.eup %3672 }
 0xc4e   :  { %1640 = vrot.lane.b32.xlu1 %v3673_v46, %s3836_s24  ;;  %v1636_v49 = vadd.f32 1.0, %v3673_v46  ;;  %v1472_v54 = vmul.f32 %v1471_v48, %v4194_v11  ;;  %v1897_v11 = vrot.slane %v3989_v18, 4 }
 0xc50   :  { %v1637_v43 = vmul.f32 0.5, %v1636_v49  ;;  %v1898_v14 = vsel %vm205_vm4, %v1897_v11, %v1896_v10 }
 0xc52   :  { %v1638_v57 = vmul.f32 %v1637_v43, %v4198_v15 }
 0xcbc   :  { %v1475_v50 = vpop.permute.xlu0 %1474 }
 0xcbd   :  { %v1477_v51 = vmul.f32 %v1475_v50, %v1471_v48 }
 0xcbf   :  { %1479 = vrot.lane.b32.xlu0 %v1477_v51, %s3837_s3 }
 0xcc0   :  { %v1641_v52 = vpop.permute.xlu1 %1640 }
 0xcc1   :  { %v1643_v53 = vmul.f32 %v1641_v52, %v1637_v43 }
 0xcc3   :  { %1645 = vrot.lane.b32.xlu1 %v1643_v53, %s3837_s3 }
 0xd31   :  { %v1480_v55 = vpop.permute.xlu0 %1479 }
 0xd32   :  { %v4241_v56 = vadd.f32 %v1480_v55, %v1472_v54  ;;  %v2233_v55 = vrot.slane %v3993_v20, 6 }
 0xd34   :  { %3674 = vtanh.f32 %v4241_v56 }
 0xd35   :  { %v1646_v59 = vpop.permute.xlu1 %1645 }
 0xd36   :  { %v4245_v60 = vadd.f32 %v1646_v59, %v1638_v57 }
 0xd38   :  { %3676 = vtanh.f32 %v4245_v60 }
 0xd3e   :  { %v3675_v0 = vpop.eup %3674 }
 0xd3f   :  { %1485 = vrot.lane.b32.xlu0 %v3675_v0, %s3836_s24 }
 0xd42   :  { %v3677_v2 = vpop.eup %3676 }
 0xd43   :  { %1651 = vrot.lane.b32.xlu1 %v3677_v2, %s3836_s24 }
 0xdb1   :  { %v1486_v4 = vpop.permute.xlu0 %1485 }
 0xdb2   :  { %v1488_v6 = vmul.f32 %v1486_v4, %v1471_v48 }
 0xdb4   :  { %1656 = vrot.lane.b32.xlu0 %v1488_v6, %s3837_s3 }
 0xdb5   :  { %v1652_v7 = vpop.permute.xlu1 %1651 }
 0xdb6   :  { %v1654_v8 = vmul.f32 %v1652_v7, %v1637_v43 }
 0xdb8   :  { %1731 = vrot.lane.b32.xlu1 %v1654_v8, %s3837_s3 }
 0xe26   :  { %v1657_v9 = vpop.permute.xlu0 %1656 }
 0xe27   :  { %3311 = vmatmul.mubr.msk.f32.vlgmr.msra.gmra.mrb[20].mxu1 %vm128_vm6, %v1657_v9 }
 0xe28   :  { %3562 = vmatpush3.bf16.msra.mxu1 %v3991_v19  ;;  %3332 = vmatprep.mubr.msk.f32.mxu1 %vm3833_vm0, %v3834_v3 }
 0xe29   :  { %3563 = vmatprep.subr.bf16.mxu1 %v3832_v1 }
 0xe2a   :  { %v1732_v12 = vpop.permute.xlu1 %1731 }
 0xe2b   :  { %3322 = vmatmul.mubr.msk.f32.vlgmr.msra.gmra.mrb[16].mxu0 %vm128_vm6, %v1732_v12 }
 0xe2c   :  { %3565 = vmatpush3.bf16.msra.mxu1 %v3999_v23  ;;  %3568 = vmatpush3.bf16.msra.mxu0 %v3996_v22 }
 0xe2d   :  { %3339 = vmatprep.mubr.msk.f32.mxu0 %vm3833_vm0, %v3834_v3  ;;  %3569 = vmatprep.subr.bf16.mxu0 %v3832_v1 }
 0xe2e   :  { %3575 = vmatprep.subr.bf16.mxu1 %v3832_v1 }
 0xe2f   :  { %3333 = vmatmul.mubr.msk.f32.vlgmr.msra.gmra.mrb[22].mxu1 %vm128_vm6, %v1732_v12  ;;  %3340 = vmatmul.mubr.msk.f32.vlgmr.msra.gmra.mrb[18].mxu0 %vm207_vm5, %v1898_v14 }
 0xe30   :  { %3571 = vmatpush3.bf16.msra.mxu0 %v4037_v58  ;;  %3577 = vmatpush3.bf16.msra.mxu1 %v4041_v61 }
 0xe31   :  { %3572 = vmatprep.subr.bf16.mxu0 %v3832_v1  ;;  %3350 = vmatprep.mubr.msk.f32.mxu0 %vm3833_vm0, %v3834_v3 }
 0xe32   :  { %3578 = vmatprep.subr.bf16.mxu1 %v3832_v1  ;;  %3361 = vmatprep.mubr.msk.f32.mxu1 %vm3833_vm0, %v3834_v3 }
 0xe34   :  { %3574 = vmatpush3.bf16.msra.mxu0 %v4044_v62  ;;  %3580 = vmatpush3.bf16.msra.mxu1 %v4048_v63 }
 0xe35   :  { %3581 = vmatprep.subr.bf16.mxu0 %v3832_v1  ;;  %3587 = vmatprep.subr.bf16.mxu1 %v3832_v1 }
 0xefa   :  { %v1726_v15 = vpop.f32.mrb[20].mxu1 }
 0xefb   :  { %v3312_v16 = vpop.f32.mrb[21].mxu1 }
 0xefe   :  { %v1801_v17 = vpop.f32.mrb[16].mxu0 }
 0xeff   :  { %v1802_v21 = vadd.f32 %v1801_v17, %v1726_v15  ;;  %v3323_v24 = vpop.f32.mrb[17].mxu0 }
 0xf01   :  { %v1805_v26 = vadd.f32 %v1802_v21, %v4092_v13 }
 0xf02   :  { %v1892_v27 = vpop.f32.mrb[22].mxu1  ;;  %v1967_v29 = vpop.f32.mrb[18].mxu0 }
 0xf03   :  { %3678 = vtanh.f32 %v1805_v26  ;;  %v3334_v30 = vpop.f32.mrb[23].mxu1  ;;  %v1968_v32 = vadd.f32 %v1967_v29, %v1892_v27  ;;  %v3341_v5 = vpop.f32.mrb[19].mxu0 }
 0xf05   :  { %v1971_v25 = vadd.f32 %v1968_v32, %v4023_v31 }
 0xf07   :  { %3680 = vtanh.f32 %v1971_v25 }
 0xf0d   :  { %v3679_v28 = vpop.eup %3678 }
 0xf0e   :  { %1811 = vrot.lane.b32.xlu0 %v3679_v28, %s3836_s24  ;;  %v1807_v34 = vadd.f32 1.0, %v3679_v28 }
 0xf10   :  { %v1808_v35 = vmul.f32 0.5, %v1807_v34 }
 0xf11   :  { %v3681_v33 = vpop.eup %3680 }
 0xf12   :  { %1977 = vrot.lane.b32.xlu1 %v3681_v33, %s3836_s24  ;;  %v1973_v36 = vadd.f32 1.0, %v3681_v33  ;;  %v1809_v42 = vmul.f32 %v1808_v35, %v4241_v56  ;;  %v2234_v56 = vrot.slane %v3989_v18, 5 }
 0xf14   :  { %v1974_v39 = vmul.f32 0.5, %v1973_v36  ;;  %v2235_v59 = vsel %vm205_vm4, %v2234_v56, %v2233_v55 }
 0xf16   :  { %v1975_v46 = vmul.f32 %v1974_v39, %v4245_v60 }
 0xf80   :  { %v1812_v37 = vpop.permute.xlu0 %1811 }
 0xf81   :  { %v1814_v38 = vmul.f32 %v1812_v37, %v1808_v35 }
 0xf83   :  { %1816 = vrot.lane.b32.xlu0 %v1814_v38, %s3837_s3 }
 0xf84   :  { %v1978_v40 = vpop.permute.xlu1 %1977 }
 0xf85   :  { %v1980_v41 = vmul.f32 %v1978_v40, %v1974_v39 }
 0xf87   :  { %1982 = vrot.lane.b32.xlu1 %v1980_v41, %s3837_s3  ;;  %v3706_v41 = vld [vmem:[#allocation2] sm:$0xff] }
 0xff5   :  { %v1817_v44 = vpop.permute.xlu0 %1816 }
 0xff6   :  { %v4288_v45 = vadd.f32 %v1817_v44, %v1809_v42  ;;  %v2570_v42 = vrot.slane %v3706_v41, 7  ;;  %v3707_v44 = vld [vmem:[#allocation2 + $0x8] sm:$0xff] }
 0xff8   :  { %3682 = vtanh.f32 %v4288_v45 }
 0xff9   :  { %v1983_v47 = vpop.permute.xlu1 %1982 }
 0xffa   :  { %v4292_v48 = vadd.f32 %v1983_v47, %v1975_v46 }
 0xffc   :  { %3684 = vtanh.f32 %v4292_v48 }
0x1002   :  { %v3683_v49 = vpop.eup %3682 }
0x1003   :  { %1822 = vrot.lane.b32.xlu0 %v3683_v49, %s3836_s24 }
0x1006   :  { %v3685_v50 = vpop.eup %3684 }
0x1007   :  { %1988 = vrot.lane.b32.xlu1 %v3685_v50, %s3836_s24 }
0x1075   :  { %v1823_v51 = vpop.permute.xlu0 %1822 }
0x1076   :  { %v1825_v43 = vmul.f32 %v1823_v51, %v1808_v35 }
0x1078   :  { %1993 = vrot.lane.b32.xlu0 %v1825_v43, %s3837_s3 }
0x1079   :  { %v1989_v52 = vpop.permute.xlu1 %1988 }
0x107a   :  { %v1991_v53 = vmul.f32 %v1989_v52, %v1974_v39 }
0x107c   :  { %2068 = vrot.lane.b32.xlu1 %v1991_v53, %s3837_s3 }
0x10ea   :  { %v1994_v54 = vpop.permute.xlu0 %1993 }
0x10eb   :  { %3351 = vmatmul.mubr.msk.f32.vlgmr.msra.gmra.mrb[20].mxu0 %vm128_vm6, %v1994_v54 }
0x10ec   :  { %3583 = vmatpush3.bf16.msra.mxu0 %v3991_v19  ;;  %3372 = vmatprep.mubr.msk.f32.mxu0 %vm3833_vm0, %v3834_v3 }
0x10ed   :  { %3584 = vmatprep.subr.bf16.mxu0 %v3832_v1 }
0x10ee   :  { %v2069_v57 = vpop.permute.xlu1 %2068 }
0x10ef   :  { %3362 = vmatmul.mubr.msk.f32.vlgmr.msra.gmra.mrb[24].mxu1 %vm128_vm6, %v2069_v57 }
0x10f0   :  { %3586 = vmatpush3.bf16.msra.mxu0 %v3999_v23  ;;  %3589 = vmatpush3.bf16.msra.mxu1 %v3996_v22 }
0x10f1   :  { %3379 = vmatprep.mubr.msk.f32.mxu1 %vm3833_vm0, %v3834_v3  ;;  %3590 = vmatprep.subr.bf16.mxu1 %v3832_v1 }
0x10f2   :  { %3596 = vmatprep.subr.bf16.mxu0 %v3832_v1 }
0x10f3   :  { %3373 = vmatmul.mubr.msk.f32.vlgmr.msra.gmra.mrb[22].mxu0 %vm128_vm6, %v2069_v57  ;;  %3380 = vmatmul.mubr.msk.f32.vlgmr.msra.gmra.mrb[26].mxu1 %vm207_vm5, %v2235_v59 }
0x10f4   :  { %3592 = vmatpush3.bf16.msra.mxu1 %v4037_v58  ;;  %3598 = vmatpush3.bf16.msra.mxu0 %v4041_v61 }
0x10f5   :  { %3593 = vmatprep.subr.bf16.mxu1 %v3832_v1  ;;  %3390 = vmatprep.mubr.msk.f32.mxu1 %vm3833_vm0, %v3834_v3 }
0x10f6   :  { %3599 = vmatprep.subr.bf16.mxu0 %v3832_v1  ;;  %3401 = vmatprep.mubr.msk.f32.mxu0 %vm3833_vm0, %v3834_v3 }
0x10f8   :  { %3595 = vmatpush3.bf16.msra.mxu1 %v4044_v62  ;;  %3601 = vmatpush3.bf16.msra.mxu0 %v4048_v63 }
0x10f9   :  { %3602 = vmatprep.subr.bf16.mxu1 %v3832_v1  ;;  %3608 = vmatprep.subr.bf16.mxu0 %v3832_v1 }
0x11be   :  { %v2063_v18 = vpop.f32.mrb[20].mxu0 }
0x11bf   :  { %v3352_v20 = vpop.f32.mrb[21].mxu0 }
0x11c2   :  { %v2138_v60 = vpop.f32.mrb[24].mxu1 }
0x11c3   :  { %v2139_v0 = vadd.f32 %v2138_v60, %v2063_v18  ;;  %v3363_v2 = vpop.f32.mrb[25].mxu1 }
0x11c5   :  { %v2142_v4 = vadd.f32 %v2139_v0, %v4092_v13 }
0x11c6   :  { %v2229_v6 = vpop.f32.mrb[22].mxu0  ;;  %v2304_v7 = vpop.f32.mrb[26].mxu1 }
0x11c7   :  { %3686 = vtanh.f32 %v2142_v4  ;;  %v3374_v8 = vpop.f32.mrb[23].mxu0  ;;  %v2305_v9 = vadd.f32 %v2304_v7, %v2229_v6  ;;  %v3381_v10 = vpop.f32.mrb[27].mxu1 }
0x11c9   :  { %v2308_v11 = vadd.f32 %v2305_v9, %v4023_v31 }
0x11cb   :  { %3688 = vtanh.f32 %v2308_v11 }
0x11d1   :  { %v3687_v12 = vpop.eup %3686 }
0x11d2   :  { %2148 = vrot.lane.b32.xlu0 %v3687_v12, %s3836_s24  ;;  %v2144_v15 = vadd.f32 1.0, %v3687_v12 }
0x11d4   :  { %v2145_v16 = vmul.f32 0.5, %v2144_v15 }
0x11d5   :  { %v3689_v14 = vpop.eup %3688 }
0x11d6   :  { %2314 = vrot.lane.b32.xlu1 %v3689_v14, %s3836_s24  ;;  %v2310_v17 = vadd.f32 1.0, %v3689_v14  ;;  %v2146_v30 = vmul.f32 %v2145_v16, %v4288_v45  ;;  %v2571_v45 = vrot.slane %v3707_v44, 6 }
0x11d8   :  { %v2311_v26 = vmul.f32 0.5, %v2310_v17  ;;  %v2572_v47 = vsel %vm205_vm4, %v2571_v45, %v2570_v42 }
0x11da   :  { %v2312_v25 = vmul.f32 %v2311_v26, %v4292_v48 }
0x1244   :  { %v2149_v21 = vpop.permute.xlu0 %2148 }
0x1245   :  { %v2151_v24 = vmul.f32 %v2149_v21, %v2145_v16 }
0x1247   :  { %2153 = vrot.lane.b32.xlu0 %v2151_v24, %s3837_s3 }
0x1248   :  { %v2315_v27 = vpop.permute.xlu1 %2314 }
0x1249   :  { %v2317_v29 = vmul.f32 %v2315_v27, %v2311_v26 }
0x124b   :  { %2319 = vrot.lane.b32.xlu1 %v2317_v29, %s3837_s3 }
0x12b9   :  { %v2154_v32 = vpop.permute.xlu0 %2153 }
0x12ba   :  { %v4335_v5 = vadd.f32 %v2154_v32, %v2146_v30 }
0x12bc   :  { %3690 = vtanh.f32 %v4335_v5 }
0x12bd   :  { %v2320_v28 = vpop.permute.xlu1 %2319 }
0x12be   :  { %v4339_v33 = vadd.f32 %v2320_v28, %v2312_v25 }
0x12c0   :  { %3692 = vtanh.f32 %v4339_v33 }
0x12c6   :  { %v3691_v34 = vpop.eup %3690 }
0x12c7   :  { %2159 = vrot.lane.b32.xlu0 %v3691_v34, %s3836_s24 }
0x12ca   :  { %v3693_v35 = vpop.eup %3692 }
0x12cb   :  { %2325 = vrot.lane.b32.xlu1 %v3693_v35, %s3836_s24  ;;  %v2838_v35 = vld [vmem:[%s4429_s7] sm:$0xff] }
0x1339   :  { %v2160_v36 = vpop.permute.xlu0 %2159 }
0x133a   :  { %v2162_v37 = vmul.f32 %v2160_v36, %v2145_v16  ;;  %v2840_v36 = vld [vmem:[%s4429_s7 + $0x10] sm:$0xff] }
0x133c   :  { %2330 = vrot.lane.b32.xlu0 %v2162_v37, %s3837_s3 }
0x133d   :  { %v2326_v38 = vpop.permute.xlu1 %2325 }
0x133e   :  { %v2328_v39 = vmul.f32 %v2326_v38, %v2311_v26  ;;  %v2841_v38 = vld [vmem:[%s4429_s7 + $0x18] sm:$0xff] }
0x1340   :  { %2405 = vrot.lane.b32.xlu1 %v2328_v39, %s3837_s3  ;;  %v3627_v39 = vpack.c.bf16 %v2841_v38, %v2840_v36 }
0x13ae   :  { %v2331_v40 = vpop.permute.xlu0 %2330 }
0x13af   :  { %3391 = vmatmul.mubr.msk.f32.vlgmr.msra.gmra.mrb[28].mxu1 %vm128_vm6, %v2331_v40 }
0x13b0   :  { %3604 = vmatpush3.bf16.msra.mxu1 %v3991_v19  ;;  %3412 = vmatprep.mubr.msk.f32.mxu1 %vm3833_vm0, %v3834_v3 }
0x13b1   :  { %3605 = vmatprep.subr.bf16.mxu1 %v3832_v1 }
0x13b2   :  { %v2406_v46 = vpop.permute.xlu1 %2405 }
0x13b3   :  { %3402 = vmatmul.mubr.msk.f32.vlgmr.msra.gmra.mrb[24].mxu0 %vm128_vm6, %v2406_v46 }
0x13b4   :  { %3607 = vmatpush3.bf16.msra.mxu1 %v3999_v23  ;;  %3610 = vmatpush3.bf16.msra.mxu0 %v3996_v22 }
0x13b5   :  { %3419 = vmatprep.mubr.msk.f32.mxu0 %vm3833_vm0, %v3834_v3  ;;  %3611 = vmatprep.subr.bf16.mxu0 %v3832_v1 }
0x13b6   :  { %3617 = vmatprep.subr.bf16.mxu1 %v3832_v1 }
0x13b7   :  { %3413 = vmatmul.mubr.msk.f32.vlgmr.msra.gmra.mrb[30].mxu1 %vm128_vm6, %v2406_v46  ;;  %3420 = vmatmul.mubr.msk.f32.vlgmr.msra.gmra.mrb[26].mxu0 %vm207_vm5, %v2572_v47  ;;  %v2973_v46 = vld [vmem:[%s4430_s8] ss:$0 sm:$0xff] }
0x13b8   :  { %3613 = vmatpush3.bf16.msra.mxu0 %v4037_v58  ;;  %3619 = vmatpush3.bf16.msra.mxu1 %v4041_v61 }
0x13b9   :  { %3614 = vmatprep.subr.bf16.mxu0 %v3832_v1  ;;  %3430 = vmatprep.mubr.msk.f32.mxu0 %vm3833_vm0, %v3834_v3 }
0x13ba   :  { %3620 = vmatprep.subr.bf16.mxu1 %v3832_v1  ;;  %3441 = vmatprep.mubr.msk.f32.mxu1 %vm3833_vm0, %v3834_v3 }
0x13bc   :  { %3616 = vmatpush3.bf16.msra.mxu0 %v4044_v62  ;;  %3622 = vmatpush3.bf16.msra.mxu1 %v4048_v63 }
0x13bd   :  { %3623 = vmatprep.subr.bf16.mxu0 %v3832_v1 }
0x1482   :  { %v2400_v19 = vpop.f32.mrb[28].mxu1 }
0x1483   :  { %v3392_v22 = vpop.f32.mrb[29].mxu1 }
0x1486   :  { %v2475_v23 = vpop.f32.mrb[24].mxu0 }
0x1487   :  { %v2476_v58 = vadd.f32 %v2475_v23, %v2400_v19  ;;  %v3403_v61 = vpop.f32.mrb[25].mxu0 }
0x1489   :  { %v2479_v48 = vadd.f32 %v2476_v58, %v4092_v13 }
0x148a   :  { %v2566_v49 = vpop.f32.mrb[30].mxu1  ;;  %v2641_v50 = vpop.f32.mrb[26].mxu0 }
0x148b   :  { %3694 = vtanh.f32 %v2479_v48  ;;  %v3414_v51 = vpop.f32.mrb[31].mxu1  ;;  %v2642_v43 = vadd.f32 %v2641_v50, %v2566_v49  ;;  %v3421_v52 = vpop.f32.mrb[27].mxu0 }
0x148d   :  { %v2645_v53 = vadd.f32 %v2642_v43, %v4023_v31 }
0x148f   :  { %3696 = vtanh.f32 %v2645_v53 }
0x1495   :  { %v3695_v62 = vpop.eup %3694 }
0x1496   :  { %2485 = vrot.lane.b32.xlu0 %v3695_v62, %s3836_s24  ;;  %v2481_v54 = vadd.f32 1.0, %v3695_v62 }
0x1498   :  { %v2482_v55 = vmul.f32 0.5, %v2481_v54 }
0x1499   :  { %v3697_v63 = vpop.eup %3696 }
0x149a   :  { %2651 = vrot.lane.b32.xlu1 %v3697_v63, %s3836_s24  ;;  %v2647_v56 = vadd.f32 1.0, %v3697_v63  ;;  %v2483_v31 = vmul.f32 %v2482_v55, %v4335_v5 }
0x149c   :  { %v2648_v18 = vmul.f32 0.5, %v2647_v56 }
0x149e   :  { %v2649_v4 = vmul.f32 %v2648_v18, %v4339_v33 }
0x1508   :  { %v2486_v57 = vpop.permute.xlu0 %2485 }
0x1509   :  { %v2488_v59 = vmul.f32 %v2486_v57, %v2482_v55 }
0x150b   :  { %2490 = vrot.lane.b32.xlu0 %v2488_v59, %s3837_s3 }
0x150c   :  { %v2652_v20 = vpop.permute.xlu1 %2651 }
0x150d   :  { %v2654_v60 = vmul.f32 %v2652_v20, %v2648_v18 }
0x150f   :  { %2656 = vrot.lane.b32.xlu1 %v2654_v60, %s3837_s3 }
0x157d   :  { %v2491_v0 = vpop.permute.xlu0 %2490 }
0x157e   :  { %v2493_v2 = vadd.f32 %v2491_v0, %v2483_v31 }
0x1580   :  { %3698 = vtanh.f32 %v2493_v2 }
0x1581   :  { %v2657_v6 = vpop.permute.xlu1 %2656 }
0x1582   :  { %v2659_v7 = vadd.f32 %v2657_v6, %v2649_v4 }
0x1584   :  { %3700 = vtanh.f32 %v2659_v7 }
0x158a   :  { %v3699_v8 = vpop.eup %3698 }
0x158b   :  { %2496 = vrot.lane.b32.xlu0 %v3699_v8, %s3836_s24 }
0x158e   :  { %v3701_v9 = vpop.eup %3700 }
0x158f   :  { %2662 = vrot.lane.b32.xlu1 %v3701_v9, %s3836_s24 }
0x15fd   :  { %v2497_v10 = vpop.permute.xlu0 %2496 }
0x15fe   :  { %v2499_v11 = vmul.f32 %v2497_v10, %v2482_v55 }
0x1600   :  { %2667 = vrot.lane.b32.xlu0 %v2499_v11, %s3837_s3 }
0x1601   :  { %v2663_v12 = vpop.permute.xlu1 %2662 }
0x1602   :  { %v2665_v14 = vmul.f32 %v2663_v12, %v2648_v18 }
0x1604   :  { %2742 = vrot.lane.b32.xlu1 %v2665_v14, %s3837_s3 }
0x1672   :  { %v2668_v15 = vpop.permute.xlu0 %2667 }
0x1673   :  { %3431 = vmatmul.mubr.msk.f32.vlgmr.msra.gmra.mrb[28].mxu0 %vm128_vm6, %v2668_v15 }
0x1674   :  { %3452 = vmatprep.mubr.msk.f32.mxu0 %vm3833_vm0, %v3834_v3 }
0x1676   :  { %v2743_v16 = vpop.permute.xlu1 %2742 }
0x1677   :  { %3442 = vmatmul.mubr.msk.f32.vlgmr.msra.gmra.mrb[32].mxu1 %vm128_vm6, %v2743_v16 }
0x1746   :  { %v2737_v17 = vpop.f32.mrb[28].mxu0 }
0x1747   :  { %v3432_v21 = vpop.f32.mrb[29].mxu0 }
0x174a   :  { %v2812_v24 = vpop.f32.mrb[32].mxu1 }
0x174b   :  { %v2813_v26 = vadd.f32 %v2812_v24, %v2737_v17  ;;  %v3443_v27 = vpop.f32.mrb[33].mxu1 }
0x174d   :  { %v2816_v29 = vadd.f32 %v2813_v26, %v4092_v13  ;;  %v2839_v13 = vld [vmem:[%s4429_s7 + $0x8] sm:$0xff]  ;;  %s3838_s7 = smov [#allocation10]  }
0x174e   :  { %v3624_v37 = vpack.c.bf16 %v2839_v13, %v2838_v35  ;;  %s2932_s10 = sshll.u32 %s3838_s7, 4  ;;  %s2933_s10 = int_to_ptr.vmem [resolvable:$true] %s2932_s10 }
0x174f   :  { %3702 = vtanh.f32 %v2816_v29  ;;  %s3796_s14 = scalar_lea.vmem %s2933_s10, 32  ;;  %p3801_p5 = scmp.lt.s32.totalorder %s2933_s10, %s2933_s10 }
0x1750   :  { %3625 = vmatpush3.bf16.msra.mxu0 %v3624_v37  ;;  %p3797_p4 = scmp.ne.s32.totalorder %s2933_s10, %s3796_s14  ;;  %p3802_p6 = scmp.lt.s32.totalorder %s3796_s14, %s3796_s14 }
0x1751   :  { %3626 = vmatprep.subr.bf16.mxu0 %v3832_v1 }
0x1752   :  { %p3803_p7 = por %p3802_p6, %p3801_p5 }
0x1754   :  { %3628 = vmatpush3.bf16.msra.mxu0 %v3627_v39  ;;  %p3804_p8 = pnand %p3803_p7, %p3797_p4 }
0x1759   :  { %v3703_v30 = vpop.eup %3702 }
0x175a   :  { %2822 = vrot.lane.b32.xlu0 %v3703_v30, %s3836_s24  ;;  %v2818_v32 = vadd.f32 1.0, %v3703_v30 }
0x175c   :  { %v2819_v5 = vmul.f32 0.5, %v2818_v32 }
0x175e   :  { %v2820_v3 = vmul.f32 %v2819_v5, %v2493_v2 }
0x17cc   :  { %v2823_v25 = vpop.permute.xlu0 %2822 }
0x17cd   :  { %v2825_v28 = vmul.f32 %v2823_v25, %v2819_v5 }
0x17cf   :  { %2827 = vrot.lane.b32.xlu1 %v2825_v28, %s3837_s3 }
0x1841   :  { %v2828_v33 = vpop.permute.xlu1 %2827 }
0x1842   :  { %v2830_v34 = vadd.f32 %v2828_v33, %v2820_v3 }
0x1844   :  { %3704 = vtanh.f32 %v2830_v34 }
0x184e   :  { %v3705_v40 = vpop.eup %3704 }
0x184f   :  { %2833 = vrot.lane.b32.xlu0 %v3705_v40, %s3836_s24 }
0x18c1   :  { %v2834_v41 = vpop.permute.xlu0 %2833 }
0x18c2   :  { %v2836_v42 = vmul.f32 %v2834_v41, %v2819_v5 }
0x18c4   :  { %v2837_v44 = vmax.f32 %v2836_v42, 0.0 }
0x18c6   :  { %2850 = vrot.lane.b32.xlu1 %v2837_v44, %s3837_s3 }
0x1938   :  { %v2851_v45 = vpop.permute.xlu1 %2850 }
0x1939   :  { %3453 = vmatmul.mubr.msk.f32.vlgmr.msra.gmra.mrb[30].mxu0 %vm128_vm6, %v2851_v45 }
0x1a0c   :  { %v2920_v47 = vpop.f32.mrb[30].mxu0 }
0x1a0d   :  { %v2921_v1 = vadd.f32 %v2973_v46, %v2920_v47  ;;  %v3454_v19 = vpop.f32.mrb[31].mxu0 }
0x1a0f   :  { %2925 = vst.msk [vmem:[#allocation10] sm:$0x3] %vm2924_vm7, %v2921_v1 }
0x1a10   :  { %3807 = shalt.err (!%p3804_p8)
}
0x1a11   :  { %s3808_s5 = scalar_lea.hbm %s4431_s9, 32 }
0x1a12   :  { %p3809_p9 = scmp.ne.s32.totalorder %s4431_s9, %s3808_s5  ;;  %p3812_p10 = scmp.lt.u32.totalorder %s3808_s5, %s4431_s9 }
0x1a14   :  { %p3814_p11 = pnand %p3812_p10, %p3809_p9 }
0x1a16   :  { %3817 = shalt.err (!%p3814_p11)
}
0x1a17   :  { %2935 = dma.vmem_to_hbm [thread:$0]  %s2933_s10, 32, %s4431_s9, [#allocation4]  }
0x1a18   :  { %3824 = dma.done.wait [#allocation4], 32  }
0x1a19   :  { %3825 = vsyncadd [#allocation4], 4294967264 }
0x1a1a   :  { %2939 = vsyncpa [#allocation3], 1 }
0x1a1b   :  { %2940 = vsyncpa [#allocation6], 1 }
0x1a1c   :  { %2941 = vsyncpa [#allocation9], 1 }
0x1a1d   :  { %2942 = vsyncpa [#allocation4], 1 }

</bundles_post_ra>
